<compile_context>
chip_gen: v7x
topology: tpu7x:2x2x1
jax: 0.10.0
libtpu: 0.0.40
codegen_flags: <defaults>
</compile_context>

<pallas_src>
import functools

import jax
import jax.numpy as jnp
from jax.experimental import pallas as pl
from jax.experimental.pallas import tpu as pltpu


C_PAD = 128  # lane-pad every channel dimension to a full vreg lane width


# ----------------------------------------------------------------------------
# Fused kernel: all GCN layers + decode in one invocation.
#   prefetch:  ni_ref, nj_ref     (SMEM, int32 edge endpoints)
#   inputs  :  a_ref (N,N) bf16, x_ref (N,128) f32,
#              w_ref (L,128,128) f32, b_ref (L,1,128) f32
#   output  :  o_ref (E_pad,1) f32
#   scratch :  act (N,128) f32, gi/gj (E_pad,128) f32
# ----------------------------------------------------------------------------
def _fused_gcn_kernel(ni_ref, nj_ref, a_ref, x_ref, w_ref, b_ref, o_ref,
                      act, gi, gj, *, num_layers, dist, gamma, n_pairs):
    # Current activation lives in a VMEM scratch (f32), lane-padded to 128.
    act[...] = x_ref[...]

    # Layer stack: A_hat stays resident in VMEM across all layers.
    for layer in range(num_layers):
        # H = act @ W_l   (bf16 MXU feed, f32 accumulation)
        h = jnp.dot(
            act[...].astype(jnp.bfloat16),
            w_ref[layer].astype(jnp.bfloat16),
            preferred_element_type=jnp.float32,
        )
        # Y = A_hat @ H + b_l   (A_hat already bf16 & VMEM-resident)
        y = jnp.dot(
            a_ref[...],
            h.astype(jnp.bfloat16),
            preferred_element_type=jnp.float32,
        ) + b_ref[layer]
        if layer < num_layers - 1:
            y = jnp.maximum(y, 0.0)          # ReLU on all but the last layer
        act[...] = y
        # F.dropout(training=False) is the identity — nothing to do.

    # Decode: gather the (node_i, node_j) rows into contiguous VMEM blocks,
    # then do ONE vectorized reduction over the whole (E_pad, 128) block.
    for e in range(n_pairs):                       # E is small & static
        gi[pl.ds(e, 1), :] = act[pl.ds(ni_ref[e], 1), :]
        gj[pl.ds(e, 1), :] = act[pl.ds(nj_ref[e], 1), :]

    xi = gi[...]
    xj = gj[...]
    if dist:
        d = xi - xj
        o_ref[...] = gamma - jnp.sqrt(jnp.sum(d * d, axis=-1, keepdims=True))
    else:
        o_ref[...] = jnp.sum(xi * xj, axis=-1, keepdims=True)


# ----------------------------------------------------------------------------
# Helpers
# ----------------------------------------------------------------------------
def _pad_last(a, target):
    pad = target - a.shape[-1]
    if pad > 0:
        a = jnp.pad(a, [(0, 0)] * (a.ndim - 1) + [(0, pad)])
    return a


def _pad2(w, rows, cols):
    return jnp.pad(w, ((0, rows - w.shape[0]), (0, cols - w.shape[1])))


def _vmem_limit_bytes(required):
    """Generation-aware VMEM budget (v7x has 64 MiB/TC, v5e/v6e 128 MiB)."""
    cap = 64 * 1024 * 1024  # conservative floor = v7x per-TC capacity
    try:
        cap = int(pltpu.get_tpu_info().vmem_capacity_bytes)
    except Exception:
        pass
    limit = max(2 * required, 32 * 1024 * 1024)
    return int(min(limit, int(cap * 0.6)))


# ----------------------------------------------------------------------------
# GCN_Direct forward (single fused pallas_call)
# ----------------------------------------------------------------------------
def gcn_direct_forward(params, x, a_hat, node_i, node_j, *,
                       decode_type=None, gamma=0.0):
    N, _ = x.shape
    L = len(params)
    E = int(node_i.shape[0])
    E_pad = max(8, ((E + 7) // 8) * 8)

    # ---- wrapper-side layout prep (layout plumbing, not compute hoisting)
    a_bf16 = a_hat.astype(jnp.bfloat16)          # cast ONCE, values in [0, 1]
    # TODO(synk): fp8 (v7x) / int8 (v5e, v6e) A_hat with per-matrix scale.
    x_p = _pad_last(x, C_PAD)                                    # (N, 128)
    w_stack = jnp.stack([_pad2(w, C_PAD, C_PAD) for (w, _) in params])  # (L,128,128)
    b_stack = jnp.stack([_pad_last(b.reshape(1, -1), C_PAD) for (_, b) in params])  # (L,1,128)
    ni = jnp.pad(node_i.astype(jnp.int32), (0, E_pad - E))
    nj = jnp.pad(node_j.astype(jnp.int32), (0, E_pad - E))

    # ---- VMEM footprint (A_hat + X + weights + activation scratch + gathers)
    resident_bytes = (N * N * 2 + N * C_PAD * 4 + L * C_PAD * C_PAD * 4
                      + L * C_PAD * 4 + N * C_PAD * 4 + 2 * E_pad * C_PAD * 4)
    vmem_limit = _vmem_limit_bytes(resident_bytes)
    assert resident_bytes < vmem_limit, (
        "A_hat does not fit VMEM-resident at this N; "
        "TODO(synk): fall back to the row/k-tiled per-layer path")

    kernel = functools.partial(
        _fused_gcn_kernel,
        num_layers=L,
        dist=(decode_type == "dist"),
        gamma=float(gamma),
        n_pairs=E_pad,
    )

    out = pl.pallas_call(
        kernel,
        out_shape=jax.ShapeDtypeStruct((E_pad, 1), jnp.float32),
        grid_spec=pltpu.PrefetchScalarGridSpec(
            num_scalar_prefetch=2,                 # node_i, node_j -> SMEM
            grid=(1,),
            in_specs=[
                pl.BlockSpec((N, N), lambda i, ni, nj: (0, 0)),           # A_hat (resident)
                pl.BlockSpec((N, C_PAD), lambda i, ni, nj: (0, 0)),       # X (lane-padded)
                pl.BlockSpec((L, C_PAD, C_PAD), lambda i, ni, nj: (0, 0, 0)),  # W stack
                pl.BlockSpec((L, 1, C_PAD), lambda i, ni, nj: (0, 0, 0)),      # b stack
            ],
            out_specs=pl.BlockSpec((E_pad, 1), lambda i, ni, nj: (0, 0)),
            scratch_shapes=[
                pltpu.VMEM((N, C_PAD), jnp.float32),       # activation
                pltpu.VMEM((E_pad, C_PAD), jnp.float32),   # gathered x[node_i]
                pltpu.VMEM((E_pad, C_PAD), jnp.float32),   # gathered x[node_j]
            ],
        ),
        compiler_params=pltpu.CompilerParams(
            dimension_semantics=("arbitrary",),
            vmem_limit_bytes=vmem_limit,
        ),
        cost_estimate=pl.CostEstimate(
            flops=L * (2 * N * C_PAD * C_PAD + 2 * N * N * C_PAD),
            transcendentals=E_pad if decode_type == "dist" else 0,
            bytes_accessed=(N * N * 2 + N * C_PAD * 4
                            + L * (C_PAD * C_PAD * 4 + C_PAD * 4)
                            + E_pad * 4),
        ),
    )(ni, nj, a_bf16, x_p, w_stack, b_stack)
    return out[:E, 0]


# ----------------------------------------------------------------------------
# Pure-JAX f32 reference (for correctness validation)
# ----------------------------------------------------------------------------
def gcn_direct_reference(params, x, a_hat, node_i, node_j, *,
                         decode_type=None, gamma=0.0):
    h = x
    n_layers = len(params)
    for li, (w, b) in enumerate(params):
        h = a_hat @ (h @ w) + b
        if li < n_layers - 1:
            h = jnp.maximum(h, 0.0)
    if decode_type == "dist":
        return gamma - jnp.linalg.norm(h[node_i, :] - h[node_j, :], axis=-1)
    return jnp.sum(h[node_i, :] * h[node_j, :], axis=-1)


# ----------------------------------------------------------------------------
# Helpers: deterministic params + normalized adjacency
# ----------------------------------------------------------------------------
def init_params(key, in_channels, hidden_channels, out_channels, num_layers):
    dims = [in_channels] + [hidden_channels] * (num_layers - 1) + [out_channels]
    params = []
    for li in range(num_layers):
        key, kw, kb = jax.random.split(key, 3)
        cin, cout = dims[li], dims[li + 1]
        w = jax.random.normal(kw, (cin, cout), jnp.float32) * (1.0 / jnp.sqrt(cin))
        b = 0.1 * jax.random.normal(kb, (cout,), jnp.float32)
        params.append((w, b))
    return params


def normalized_adjacency(key, n_nodes):
    # Synthetic symmetric adjacency, then A_hat = D^-1/2 (A + I) D^-1/2
    a = (jax.random.uniform(key, (n_nodes, n_nodes)) < 0.05).astype(jnp.float32)
    a = jnp.maximum(a, a.T)
    a = a + jnp.eye(n_nodes, dtype=jnp.float32)
    deg = a.sum(axis=1)
    d_inv_sqrt = 1.0 / jnp.sqrt(deg)
    return a * d_inv_sqrt[:, None] * d_inv_sqrt[None, :]


if __name__ == "__main__":
    key = jax.random.PRNGKey(0)
    k_feat, k_adj, k_par, k_i, k_j = jax.random.split(key, 5)

    N = 256            # number of nodes
    IN_C, HID_C, OUT_C = 32, 32, 16
    NUM_LAYERS = 3
    E = 8              # number of (i, j) query pairs

    x = jax.random.normal(k_feat, (N, IN_C), jnp.float32)
    a_hat = normalized_adjacency(k_adj, N)
    params = init_params(k_par, IN_C, HID_C, OUT_C, NUM_LAYERS)
    node_i = jax.random.randint(k_i, (E,), 0, N)
    node_j = jax.random.randint(k_j, (E,), 0, N)

    out_dot = gcn_direct_forward(params, x, a_hat, node_i, node_j,
                                 decode_type=None)
    out_dist = gcn_direct_forward(params, x, a_hat, node_i, node_j,
                                  decode_type="dist", gamma=0.5)
    jax.block_until_ready((out_dot, out_dist))
    assert out_dot.shape == (E,)
    assert out_dist.shape == (E,)

    # Validate vs f32 reference (kernel uses bf16 MXU inputs, f32 accumulation).
    ref_dot = gcn_direct_reference(params, x, a_hat, node_i, node_j,
                                   decode_type=None)
    ref_dist = gcn_direct_reference(params, x, a_hat, node_i, node_j,
                                    decode_type="dist", gamma=0.5)

    def _close(a, b):
        return float(jnp.max(jnp.abs(a - b))) <= 5e-2 * (1.0 + float(jnp.max(jnp.abs(b))))

    assert _close(out_dot, ref_dot), "dot decoder mismatch vs reference"
    assert _close(out_dist, ref_dist), "dist decoder mismatch vs reference"

    print("KERNEL_OK")
</pallas_src>

<mosaic_0001>
module attributes {stable_mosaic.version = 11 : i64} {
  func.func @_fused_gcn_kernel(%arg0: i32, %arg1: memref<8xi32, #tpu.memory_space<smem>>, %arg2: memref<8xi32, #tpu.memory_space<smem>>, %arg3: memref<256x256xbf16, #tpu.memory_space<vmem>>, %arg4: memref<256x128xf32, #tpu.memory_space<vmem>>, %arg5: memref<3x128x128xf32, #tpu.memory_space<vmem>>, %arg6: memref<3x1x128xf32, #tpu.memory_space<vmem>>, %arg7: memref<8x1xf32, #tpu.memory_space<vmem>>, %arg8: memref<256x128xf32, #tpu.memory_space<vmem>>, %arg9: memref<8x128xf32, #tpu.memory_space<vmem>>, %arg10: memref<8x128xf32, #tpu.memory_space<vmem>>) attributes {dimension_semantics = [#tpu.dimension_semantics<arbitrary>], iteration_bounds = array<i64: 1>, scalar_prefetch = 2 : i64, scratch_operands = 3 : i64, tpu.core_type = #tpu.core_type<tc>, window_params = [{pipeline_mode = #tpu.pipeline_mode<synchronous>, transform_indices = @transform_0, window_bounds = array<i64: 256, 256>}, {pipeline_mode = #tpu.pipeline_mode<synchronous>, transform_indices = @transform_1, window_bounds = array<i64: 256, 128>}, {pipeline_mode = #tpu.pipeline_mode<synchronous>, transform_indices = @transform_2, window_bounds = array<i64: 3, 128, 128>}, {pipeline_mode = #tpu.pipeline_mode<synchronous>, transform_indices = @transform_3, window_bounds = array<i64: 3, 1, 128>}, {pipeline_mode = #tpu.pipeline_mode<synchronous>, transform_indices = @transform_4, window_bounds = array<i64: 8, 1>}]} {
    %c0 = arith.constant 0 : index
    %c0_0 = arith.constant 0 : index
    %0 = vector.load %arg4[%c0, %c0_0] : memref<256x128xf32, #tpu.memory_space<vmem>>, vector<256x128xf32>
    %c0_1 = arith.constant 0 : index
    %c0_2 = arith.constant 0 : index
    %1 = vector.load %arg8[%c0_1, %c0_2] : memref<256x128xf32, #tpu.memory_space<vmem>>, vector<256x128xf32>
    tpu.vector_store %arg8[%c0_1, %c0_2], %0 {strides = array<i32>} : memref<256x128xf32, #tpu.memory_space<vmem>>, vector<256x128xf32>,
    %c0_3 = arith.constant 0 : index
    %c0_4 = arith.constant 0 : index
    %2 = vector.load %arg8[%c0_3, %c0_4] : memref<256x128xf32, #tpu.memory_space<vmem>>, vector<256x128xf32>
    %3 = arith.truncf %2 : vector<256x128xf32> to vector<256x128xbf16>
    %c0_5 = arith.constant 0 : index
    %c0_6 = arith.constant 0 : index
    %c0_7 = arith.constant 0 : index
    %4 = vector.load %arg5[%c0_5, %c0_6, %c0_7] : memref<3x128x128xf32, #tpu.memory_space<vmem>>, vector<1x128x128xf32>
    %5 = vector.shape_cast %4 : vector<1x128x128xf32> to vector<128x128xf32>
    %6 = arith.truncf %5 : vector<128x128xf32> to vector<128x128xbf16>
    %cst = arith.constant dense<0.000000e+00> : vector<256x128xf32>
    %7 = tpu.matmul %3, %6, %cst {dimension_numbers = #tpu.dot_dimension_numbers<[1], [0], [0], [1], [0, 0, 1, 1], [], []>} : vector<256x128xbf16>, vector<128x128xbf16>, vector<256x128xf32> -> vector<256x128xf32>
    %c0_8 = arith.constant 0 : index
    %c0_9 = arith.constant 0 : index
    %8 = vector.load %arg3[%c0_8, %c0_9] : memref<256x256xbf16, #tpu.memory_space<vmem>>, vector<256x256xbf16>
    %9 = arith.truncf %7 : vector<256x128xf32> to vector<256x128xbf16>
    %cst_10 = arith.constant dense<0.000000e+00> : vector<256x128xf32>
    %10 = tpu.matmul %8, %9, %cst_10 {dimension_numbers = #tpu.dot_dimension_numbers<[1], [0], [0], [1], [0, 0, 1, 1], [], []>} : vector<256x256xbf16>, vector<256x128xbf16>, vector<256x128xf32> -> vector<256x128xf32>
    %c0_11 = arith.constant 0 : index
    %c0_12 = arith.constant 0 : index
    %c0_13 = arith.constant 0 : index
    %11 = vector.load %arg6[%c0_11, %c0_12, %c0_13] : memref<3x1x128xf32, #tpu.memory_space<vmem>>, vector<1x1x128xf32>
    %12 = vector.shape_cast %11 : vector<1x1x128xf32> to vector<1x128xf32>
    %13 = vector.broadcast %12 : vector<1x128xf32> to vector<256x128xf32>
    %14 = arith.addf %10, %13 : vector<256x128xf32>
    %cst_14 = arith.constant 0.000000e+00 : f32
    %15 = vector.broadcast %cst_14 : f32 to vector<256x128xf32>
    %16 = arith.maximumf %14, %15 : vector<256x128xf32>
    %c0_15 = arith.constant 0 : index
    %c0_16 = arith.constant 0 : index
    %17 = vector.load %arg8[%c0_15, %c0_16] : memref<256x128xf32, #tpu.memory_space<vmem>>, vector<256x128xf32>
    tpu.vector_store %arg8[%c0_15, %c0_16], %16 {strides = array<i32>} : memref<256x128xf32, #tpu.memory_space<vmem>>, vector<256x128xf32>,
    %c0_17 = arith.constant 0 : index
    %c0_18 = arith.constant 0 : index
    %18 = vector.load %arg8[%c0_17, %c0_18] : memref<256x128xf32, #tpu.memory_space<vmem>>, vector<256x128xf32>
    %19 = arith.truncf %18 : vector<256x128xf32> to vector<256x128xbf16>
    %c1 = arith.constant 1 : index
    %c0_19 = arith.constant 0 : index
    %c0_20 = arith.constant 0 : index
    %20 = vector.load %arg5[%c1, %c0_19, %c0_20] : memref<3x128x128xf32, #tpu.memory_space<vmem>>, vector<1x128x128xf32>
    %21 = vector.shape_cast %20 : vector<1x128x128xf32> to vector<128x128xf32>
    %22 = arith.truncf %21 : vector<128x128xf32> to vector<128x128xbf16>
    %cst_21 = arith.constant dense<0.000000e+00> : vector<256x128xf32>
    %23 = tpu.matmul %19, %22, %cst_21 {dimension_numbers = #tpu.dot_dimension_numbers<[1], [0], [0], [1], [0, 0, 1, 1], [], []>} : vector<256x128xbf16>, vector<128x128xbf16>, vector<256x128xf32> -> vector<256x128xf32>
    %c0_22 = arith.constant 0 : index
    %c0_23 = arith.constant 0 : index
    %24 = vector.load %arg3[%c0_22, %c0_23] : memref<256x256xbf16, #tpu.memory_space<vmem>>, vector<256x256xbf16>
    %25 = arith.truncf %23 : vector<256x128xf32> to vector<256x128xbf16>
    %cst_24 = arith.constant dense<0.000000e+00> : vector<256x128xf32>
    %26 = tpu.matmul %24, %25, %cst_24 {dimension_numbers = #tpu.dot_dimension_numbers<[1], [0], [0], [1], [0, 0, 1, 1], [], []>} : vector<256x256xbf16>, vector<256x128xbf16>, vector<256x128xf32> -> vector<256x128xf32>
    %c1_25 = arith.constant 1 : index
    %c0_26 = arith.constant 0 : index
    %c0_27 = arith.constant 0 : index
    %27 = vector.load %arg6[%c1_25, %c0_26, %c0_27] : memref<3x1x128xf32, #tpu.memory_space<vmem>>, vector<1x1x128xf32>
    %28 = vector.shape_cast %27 : vector<1x1x128xf32> to vector<1x128xf32>
    %29 = vector.broadcast %28 : vector<1x128xf32> to vector<256x128xf32>
    %30 = arith.addf %26, %29 : vector<256x128xf32>
    %cst_28 = arith.constant 0.000000e+00 : f32
    %31 = vector.broadcast %cst_28 : f32 to vector<256x128xf32>
    %32 = arith.maximumf %30, %31 : vector<256x128xf32>
    %c0_29 = arith.constant 0 : index
    %c0_30 = arith.constant 0 : index
    %33 = vector.load %arg8[%c0_29, %c0_30] : memref<256x128xf32, #tpu.memory_space<vmem>>, vector<256x128xf32>
    tpu.vector_store %arg8[%c0_29, %c0_30], %32 {strides = array<i32>} : memref<256x128xf32, #tpu.memory_space<vmem>>, vector<256x128xf32>,
    %c0_31 = arith.constant 0 : index
    %c0_32 = arith.constant 0 : index
    %34 = vector.load %arg8[%c0_31, %c0_32] : memref<256x128xf32, #tpu.memory_space<vmem>>, vector<256x128xf32>
    %35 = arith.truncf %34 : vector<256x128xf32> to vector<256x128xbf16>
    %c2 = arith.constant 2 : index
    %c0_33 = arith.constant 0 : index
    %c0_34 = arith.constant 0 : index
    %36 = vector.load %arg5[%c2, %c0_33, %c0_34] : memref<3x128x128xf32, #tpu.memory_space<vmem>>, vector<1x128x128xf32>
    %37 = vector.shape_cast %36 : vector<1x128x128xf32> to vector<128x128xf32>
    %38 = arith.truncf %37 : vector<128x128xf32> to vector<128x128xbf16>
    %cst_35 = arith.constant dense<0.000000e+00> : vector<256x128xf32>
    %39 = tpu.matmul %35, %38, %cst_35 {dimension_numbers = #tpu.dot_dimension_numbers<[1], [0], [0], [1], [0, 0, 1, 1], [], []>} : vector<256x128xbf16>, vector<128x128xbf16>, vector<256x128xf32> -> vector<256x128xf32>
    %c0_36 = arith.constant 0 : index
    %c0_37 = arith.constant 0 : index
    %40 = vector.load %arg3[%c0_36, %c0_37] : memref<256x256xbf16, #tpu.memory_space<vmem>>, vector<256x256xbf16>
    %41 = arith.truncf %39 : vector<256x128xf32> to vector<256x128xbf16>
    %cst_38 = arith.constant dense<0.000000e+00> : vector<256x128xf32>
    %42 = tpu.matmul %40, %41, %cst_38 {dimension_numbers = #tpu.dot_dimension_numbers<[1], [0], [0], [1], [0, 0, 1, 1], [], []>} : vector<256x256xbf16>, vector<256x128xbf16>, vector<256x128xf32> -> vector<256x128xf32>
    %c2_39 = arith.constant 2 : index
    %c0_40 = arith.constant 0 : index
    %c0_41 = arith.constant 0 : index
    %43 = vector.load %arg6[%c2_39, %c0_40, %c0_41] : memref<3x1x128xf32, #tpu.memory_space<vmem>>, vector<1x1x128xf32>
    %44 = vector.shape_cast %43 : vector<1x1x128xf32> to vector<1x128xf32>
    %45 = vector.broadcast %44 : vector<1x128xf32> to vector<256x128xf32>
    %46 = arith.addf %42, %45 : vector<256x128xf32>
    %c0_42 = arith.constant 0 : index
    %c0_43 = arith.constant 0 : index
    %47 = vector.load %arg8[%c0_42, %c0_43] : memref<256x128xf32, #tpu.memory_space<vmem>>, vector<256x128xf32>
    tpu.vector_store %arg8[%c0_42, %c0_43], %46 {strides = array<i32>} : memref<256x128xf32, #tpu.memory_space<vmem>>, vector<256x128xf32>,
    %c0_44 = arith.constant 0 : index
    %48 = memref.load %arg1[%c0_44] : memref<8xi32, #tpu.memory_space<smem>>
    %49 = arith.index_cast %48 : i32 to index
    %c0_45 = arith.constant 0 : index
    %50 = vector.load %arg8[%49, %c0_45] : memref<256x128xf32, #tpu.memory_space<vmem>>, vector<1x128xf32>
    %c0_46 = arith.constant 0 : index
    %c0_47 = arith.constant 0 : index
    %51 = vector.load %arg9[%c0_46, %c0_47] : memref<8x128xf32, #tpu.memory_space<vmem>>, vector<1x128xf32>
    tpu.vector_store %arg9[%c0_46, %c0_47], %50 {strides = array<i32>} : memref<8x128xf32, #tpu.memory_space<vmem>>, vector<1x128xf32>,
    %c0_48 = arith.constant 0 : index
    %52 = memref.load %arg2[%c0_48] : memref<8xi32, #tpu.memory_space<smem>>
    %53 = arith.index_cast %52 : i32 to index
    %c0_49 = arith.constant 0 : index
    %54 = vector.load %arg8[%53, %c0_49] : memref<256x128xf32, #tpu.memory_space<vmem>>, vector<1x128xf32>
    %c0_50 = arith.constant 0 : index
    %c0_51 = arith.constant 0 : index
    %55 = vector.load %arg10[%c0_50, %c0_51] : memref<8x128xf32, #tpu.memory_space<vmem>>, vector<1x128xf32>
    tpu.vector_store %arg10[%c0_50, %c0_51], %54 {strides = array<i32>} : memref<8x128xf32, #tpu.memory_space<vmem>>, vector<1x128xf32>,
    %c1_52 = arith.constant 1 : index
    %56 = memref.load %arg1[%c1_52] : memref<8xi32, #tpu.memory_space<smem>>
    %57 = arith.index_cast %56 : i32 to index
    %c0_53 = arith.constant 0 : index
    %58 = vector.load %arg8[%57, %c0_53] : memref<256x128xf32, #tpu.memory_space<vmem>>, vector<1x128xf32>
    %c1_54 = arith.constant 1 : index
    %c0_55 = arith.constant 0 : index
    %59 = vector.load %arg9[%c1_54, %c0_55] : memref<8x128xf32, #tpu.memory_space<vmem>>, vector<1x128xf32>
    tpu.vector_store %arg9[%c1_54, %c0_55], %58 {strides = array<i32>} : memref<8x128xf32, #tpu.memory_space<vmem>>, vector<1x128xf32>,
    %c1_56 = arith.constant 1 : index
    %60 = memref.load %arg2[%c1_56] : memref<8xi32, #tpu.memory_space<smem>>
    %61 = arith.index_cast %60 : i32 to index
    %c0_57 = arith.constant 0 : index
    %62 = vector.load %arg8[%61, %c0_57] : memref<256x128xf32, #tpu.memory_space<vmem>>, vector<1x128xf32>
    %c1_58 = arith.constant 1 : index
    %c0_59 = arith.constant 0 : index
    %63 = vector.load %arg10[%c1_58, %c0_59] : memref<8x128xf32, #tpu.memory_space<vmem>>, vector<1x128xf32>
    tpu.vector_store %arg10[%c1_58, %c0_59], %62 {strides = array<i32>} : memref<8x128xf32, #tpu.memory_space<vmem>>, vector<1x128xf32>,
    %c2_60 = arith.constant 2 : index
    %64 = memref.load %arg1[%c2_60] : memref<8xi32, #tpu.memory_space<smem>>
    %65 = arith.index_cast %64 : i32 to index
    %c0_61 = arith.constant 0 : index
    %66 = vector.load %arg8[%65, %c0_61] : memref<256x128xf32, #tpu.memory_space<vmem>>, vector<1x128xf32>
    %c2_62 = arith.constant 2 : index
    %c0_63 = arith.constant 0 : index
    %67 = vector.load %arg9[%c2_62, %c0_63] : memref<8x128xf32, #tpu.memory_space<vmem>>, vector<1x128xf32>
    tpu.vector_store %arg9[%c2_62, %c0_63], %66 {strides = array<i32>} : memref<8x128xf32, #tpu.memory_space<vmem>>, vector<1x128xf32>,
    %c2_64 = arith.constant 2 : index
    %68 = memref.load %arg2[%c2_64] : memref<8xi32, #tpu.memory_space<smem>>
    %69 = arith.index_cast %68 : i32 to index
    %c0_65 = arith.constant 0 : index
    %70 = vector.load %arg8[%69, %c0_65] : memref<256x128xf32, #tpu.memory_space<vmem>>, vector<1x128xf32>
    %c2_66 = arith.constant 2 : index
    %c0_67 = arith.constant 0 : index
    %71 = vector.load %arg10[%c2_66, %c0_67] : memref<8x128xf32, #tpu.memory_space<vmem>>, vector<1x128xf32>
    tpu.vector_store %arg10[%c2_66, %c0_67], %70 {strides = array<i32>} : memref<8x128xf32, #tpu.memory_space<vmem>>, vector<1x128xf32>,
    %c3 = arith.constant 3 : index
    %72 = memref.load %arg1[%c3] : memref<8xi32, #tpu.memory_space<smem>>
    %73 = arith.index_cast %72 : i32 to index
    %c0_68 = arith.constant 0 : index
    %74 = vector.load %arg8[%73, %c0_68] : memref<256x128xf32, #tpu.memory_space<vmem>>, vector<1x128xf32>
    %c3_69 = arith.constant 3 : index
    %c0_70 = arith.constant 0 : index
    %75 = vector.load %arg9[%c3_69, %c0_70] : memref<8x128xf32, #tpu.memory_space<vmem>>, vector<1x128xf32>
    tpu.vector_store %arg9[%c3_69, %c0_70], %74 {strides = array<i32>} : memref<8x128xf32, #tpu.memory_space<vmem>>, vector<1x128xf32>,
    %c3_71 = arith.constant 3 : index
    %76 = memref.load %arg2[%c3_71] : memref<8xi32, #tpu.memory_space<smem>>
    %77 = arith.index_cast %76 : i32 to index
    %c0_72 = arith.constant 0 : index
    %78 = vector.load %arg8[%77, %c0_72] : memref<256x128xf32, #tpu.memory_space<vmem>>, vector<1x128xf32>
    %c3_73 = arith.constant 3 : index
    %c0_74 = arith.constant 0 : index
    %79 = vector.load %arg10[%c3_73, %c0_74] : memref<8x128xf32, #tpu.memory_space<vmem>>, vector<1x128xf32>
    tpu.vector_store %arg10[%c3_73, %c0_74], %78 {strides = array<i32>} : memref<8x128xf32, #tpu.memory_space<vmem>>, vector<1x128xf32>,
    %c4 = arith.constant 4 : index
    %80 = memref.load %arg1[%c4] : memref<8xi32, #tpu.memory_space<smem>>
    %81 = arith.index_cast %80 : i32 to index
    %c0_75 = arith.constant 0 : index
    %82 = vector.load %arg8[%81, %c0_75] : memref<256x128xf32, #tpu.memory_space<vmem>>, vector<1x128xf32>
    %c4_76 = arith.constant 4 : index
    %c0_77 = arith.constant 0 : index
    %83 = vector.load %arg9[%c4_76, %c0_77] : memref<8x128xf32, #tpu.memory_space<vmem>>, vector<1x128xf32>
    tpu.vector_store %arg9[%c4_76, %c0_77], %82 {strides = array<i32>} : memref<8x128xf32, #tpu.memory_space<vmem>>, vector<1x128xf32>,
    %c4_78 = arith.constant 4 : index
    %84 = memref.load %arg2[%c4_78] : memref<8xi32, #tpu.memory_space<smem>>
    %85 = arith.index_cast %84 : i32 to index
    %c0_79 = arith.constant 0 : index
    %86 = vector.load %arg8[%85, %c0_79] : memref<256x128xf32, #tpu.memory_space<vmem>>, vector<1x128xf32>
    %c4_80 = arith.constant 4 : index
    %c0_81 = arith.constant 0 : index
    %87 = vector.load %arg10[%c4_80, %c0_81] : memref<8x128xf32, #tpu.memory_space<vmem>>, vector<1x128xf32>
    tpu.vector_store %arg10[%c4_80, %c0_81], %86 {strides = array<i32>} : memref<8x128xf32, #tpu.memory_space<vmem>>, vector<1x128xf32>,
    %c5 = arith.constant 5 : index
    %88 = memref.load %arg1[%c5] : memref<8xi32, #tpu.memory_space<smem>>
    %89 = arith.index_cast %88 : i32 to index
    %c0_82 = arith.constant 0 : index
    %90 = vector.load %arg8[%89, %c0_82] : memref<256x128xf32, #tpu.memory_space<vmem>>, vector<1x128xf32>
    %c5_83 = arith.constant 5 : index
    %c0_84 = arith.constant 0 : index
    %91 = vector.load %arg9[%c5_83, %c0_84] : memref<8x128xf32, #tpu.memory_space<vmem>>, vector<1x128xf32>
    tpu.vector_store %arg9[%c5_83, %c0_84], %90 {strides = array<i32>} : memref<8x128xf32, #tpu.memory_space<vmem>>, vector<1x128xf32>,
    %c5_85 = arith.constant 5 : index
    %92 = memref.load %arg2[%c5_85] : memref<8xi32, #tpu.memory_space<smem>>
    %93 = arith.index_cast %92 : i32 to index
    %c0_86 = arith.constant 0 : index
    %94 = vector.load %arg8[%93, %c0_86] : memref<256x128xf32, #tpu.memory_space<vmem>>, vector<1x128xf32>
    %c5_87 = arith.constant 5 : index
    %c0_88 = arith.constant 0 : index
    %95 = vector.load %arg10[%c5_87, %c0_88] : memref<8x128xf32, #tpu.memory_space<vmem>>, vector<1x128xf32>
    tpu.vector_store %arg10[%c5_87, %c0_88], %94 {strides = array<i32>} : memref<8x128xf32, #tpu.memory_space<vmem>>, vector<1x128xf32>,
    %c6 = arith.constant 6 : index
    %96 = memref.load %arg1[%c6] : memref<8xi32, #tpu.memory_space<smem>>
    %97 = arith.index_cast %96 : i32 to index
    %c0_89 = arith.constant 0 : index
    %98 = vector.load %arg8[%97, %c0_89] : memref<256x128xf32, #tpu.memory_space<vmem>>, vector<1x128xf32>
    %c6_90 = arith.constant 6 : index
    %c0_91 = arith.constant 0 : index
    %99 = vector.load %arg9[%c6_90, %c0_91] : memref<8x128xf32, #tpu.memory_space<vmem>>, vector<1x128xf32>
    tpu.vector_store %arg9[%c6_90, %c0_91], %98 {strides = array<i32>} : memref<8x128xf32, #tpu.memory_space<vmem>>, vector<1x128xf32>,
    %c6_92 = arith.constant 6 : index
    %100 = memref.load %arg2[%c6_92] : memref<8xi32, #tpu.memory_space<smem>>
    %101 = arith.index_cast %100 : i32 to index
    %c0_93 = arith.constant 0 : index
    %102 = vector.load %arg8[%101, %c0_93] : memref<256x128xf32, #tpu.memory_space<vmem>>, vector<1x128xf32>
    %c6_94 = arith.constant 6 : index
    %c0_95 = arith.constant 0 : index
    %103 = vector.load %arg10[%c6_94, %c0_95] : memref<8x128xf32, #tpu.memory_space<vmem>>, vector<1x128xf32>
    tpu.vector_store %arg10[%c6_94, %c0_95], %102 {strides = array<i32>} : memref<8x128xf32, #tpu.memory_space<vmem>>, vector<1x128xf32>,
    %c7 = arith.constant 7 : index
    %104 = memref.load %arg1[%c7] : memref<8xi32, #tpu.memory_space<smem>>
    %105 = arith.index_cast %104 : i32 to index
    %c0_96 = arith.constant 0 : index
    %106 = vector.load %arg8[%105, %c0_96] : memref<256x128xf32, #tpu.memory_space<vmem>>, vector<1x128xf32>
    %c7_97 = arith.constant 7 : index
    %c0_98 = arith.constant 0 : index
    %107 = vector.load %arg9[%c7_97, %c0_98] : memref<8x128xf32, #tpu.memory_space<vmem>>, vector<1x128xf32>
    tpu.vector_store %arg9[%c7_97, %c0_98], %106 {strides = array<i32>} : memref<8x128xf32, #tpu.memory_space<vmem>>, vector<1x128xf32>,
    %c7_99 = arith.constant 7 : index
    %108 = memref.load %arg2[%c7_99] : memref<8xi32, #tpu.memory_space<smem>>
    %109 = arith.index_cast %108 : i32 to index
    %c0_100 = arith.constant 0 : index
    %110 = vector.load %arg8[%109, %c0_100] : memref<256x128xf32, #tpu.memory_space<vmem>>, vector<1x128xf32>
    %c7_101 = arith.constant 7 : index
    %c0_102 = arith.constant 0 : index
    %111 = vector.load %arg10[%c7_101, %c0_102] : memref<8x128xf32, #tpu.memory_space<vmem>>, vector<1x128xf32>
    tpu.vector_store %arg10[%c7_101, %c0_102], %110 {strides = array<i32>} : memref<8x128xf32, #tpu.memory_space<vmem>>, vector<1x128xf32>,
    %c0_103 = arith.constant 0 : index
    %c0_104 = arith.constant 0 : index
    %112 = vector.load %arg9[%c0_103, %c0_104] : memref<8x128xf32, #tpu.memory_space<vmem>>, vector<8x128xf32>
    %c0_105 = arith.constant 0 : index
    %c0_106 = arith.constant 0 : index
    %113 = vector.load %arg10[%c0_105, %c0_106] : memref<8x128xf32, #tpu.memory_space<vmem>>, vector<8x128xf32>
    %114 = arith.mulf %112, %113 : vector<8x128xf32>
    %cst_107 = arith.constant dense<0.000000e+00> : vector<8xf32>
    %115 = vector.multi_reduction <add>, %114, %cst_107 [1] : vector<8x128xf32> to vector<8xf32>
    %116 = vector.shape_cast %115 : vector<8xf32> to vector<8x1xf32>
    %c0_108 = arith.constant 0 : index
    %c0_109 = arith.constant 0 : index
    %117 = vector.load %arg7[%c0_108, %c0_109] : memref<8x1xf32, #tpu.memory_space<vmem>>, vector<8x1xf32>
    tpu.vector_store %arg7[%c0_108, %c0_109], %116 {strides = array<i32>} : memref<8x1xf32, #tpu.memory_space<vmem>>, vector<8x1xf32>,
    return
  }
  func.func @transform_0(%arg0: i32, %arg1: memref<8xi32, #tpu.memory_space<smem>>, %arg2: memref<8xi32, #tpu.memory_space<smem>>) -> (i32, i32) {
    %c0_i32 = arith.constant 0 : i32
    %c0_i32_0 = arith.constant 0 : i32
    %c0_i32_1 = arith.constant 0 : i32
    return %c0_i32, %c0_i32_0 : i32, i32
  }
  func.func @transform_1(%arg0: i32, %arg1: memref<8xi32, #tpu.memory_space<smem>>, %arg2: memref<8xi32, #tpu.memory_space<smem>>) -> (i32, i32) {
    %c0_i32 = arith.constant 0 : i32
    %c0_i32_0 = arith.constant 0 : i32
    %c0_i32_1 = arith.constant 0 : i32
    return %c0_i32, %c0_i32_0 : i32, i32
  }
  func.func @transform_2(%arg0: i32, %arg1: memref<8xi32, #tpu.memory_space<smem>>, %arg2: memref<8xi32, #tpu.memory_space<smem>>) -> (i32, i32, i32) {
    %c0_i32 = arith.constant 0 : i32
    %c0_i32_0 = arith.constant 0 : i32
    %c0_i32_1 = arith.constant 0 : i32
    %c0_i32_2 = arith.constant 0 : i32
    return %c0_i32, %c0_i32_0, %c0_i32_1 : i32, i32, i32
  }
  func.func @transform_3(%arg0: i32, %arg1: memref<8xi32, #tpu.memory_space<smem>>, %arg2: memref<8xi32, #tpu.memory_space<smem>>) -> (i32, i32, i32) {
    %c0_i32 = arith.constant 0 : i32
    %c0_i32_0 = arith.constant 0 : i32
    %c0_i32_1 = arith.constant 0 : i32
    %c0_i32_2 = arith.constant 0 : i32
    return %c0_i32, %c0_i32_0, %c0_i32_1 : i32, i32, i32
  }
  func.func @transform_4(%arg0: i32, %arg1: memref<8xi32, #tpu.memory_space<smem>>, %arg2: memref<8xi32, #tpu.memory_space<smem>>) -> (i32, i32) {
    %c0_i32 = arith.constant 0 : i32
    %c0_i32_0 = arith.constant 0 : i32
    %c0_i32_1 = arith.constant 0 : i32
    return %c0_i32, %c0_i32_0 : i32, i32
  }
}

</mosaic_0001>

<bundles_post_ra>
// kernel: tpu_custom_call.1
= control target key start
LH: loop header
LB: loop body
LE: loop exit
PB: predicated region body
PF: predicated region fallthrough
CT: control target
= control target key end

     0   :  { %s3493_s0 = inlined_call_operand.hbm [shape: s32[8], index: 0, kind: input, shape index: {}]   ;;  %s3494_s2 = inlined_call_operand.hbm [shape: bf16[256,256], index: 2, kind: input, shape index: {}]   ;;  %s3495_s3 = inlined_call_operand.hbm [shape: f32[256,128], index: 3, kind: input, shape index: {}]   ;;  %s3496_s4 = inlined_call_operand.hbm [shape: f32[3,128,128], index: 4, kind: input, shape index: {}]   ;;  %s3497_s5 = inlined_call_operand.vmem [shape: f32[3,1,128], index: 5, kind: input, shape index: {}]   ;;  %s3498_s6 = inlined_call_operand.vmem [shape: f32[8,1], index: 6, kind: output, shape index: {}]   ;;  %s3499_s1 = inlined_call_operand.vmem [shape: s32[8], index: 1, kind: input, shape index: {}]  }
   0x1   :  { %s3003_s23 = scalar_lea.hbm %s3493_s0, 16 }
   0x2   :  { %p3004_p0 = scmp.ne.s32.totalorder %s3493_s0, %s3003_s23  ;;  %p3007_p1 = scmp.lt.u32.totalorder %s3003_s23, %s3493_s0 }
   0x4   :  { %p3009_p2 = pnand %p3007_p1, %p3004_p0 }
   0x6   :  { %3012 = shalt.err (!%p3009_p2)  }
   0x7   :  { %s3097_s28 = smov [#allocation6]   ;;  %s13_s9 = sshll.u32 %s3499_s1, 4  ;;  %s14_s9 = int_to_ptr.vmem [resolvable:$true] %s13_s9 }
   0x8   :  { %12 = dma.hbm_to_smem %s3493_s0, 16, %s3097_s28, [#allocation5] }
   0x9   :  { %s3013_s10 = scalar_lea.vmem %s14_s9, 16  ;;  %p3018_p4 = scmp.lt.s32.totalorder %s14_s9, %s14_s9 }
   0xa   :  { %p3014_p3 = scmp.ne.s32.totalorder %s14_s9, %s3013_s10  ;;  %p3019_p5 = scmp.lt.s32.totalorder %s3013_s10, %s3013_s10 }
   0xc   :  { %p3020_p6 = por %p3019_p5, %p3018_p4 }
   0xe   :  { %p3021_p7 = pnand %p3020_p6, %p3014_p3 }
  0x10   :  { %3024 = shalt.err (!%p3021_p7)  }
  0x11   :  { %s3098_s11 = smov [#allocation7]  }
  0x12   :  { %16 = dma.vmem_to_smem %s14_s9, 16, %s3098_s11, [#allocation5] }
  0x13   :  { %3091 = dma.done.wait [#allocation5], 32 }
  0x14   :  { %3092 = vsyncadd [#allocation5], 4294967264 }
  0x15   :  { %18 = sfence }
  0x16   :  { %19 = vsyncpa [#allocation9], 0 }
  0x17   :  { %20 = vsyncpa [#allocation11], 0  ;;  %s3099_s0 = smov [#allocation10]   ;;  %s3100_s13 = smov [#allocation8]  }
  0x18   :  { %s38_s12 = sshll.u32 %s3099_s0, 4  ;;  %s26_s14 = sshll.u32 %s3100_s13, 4  ;;  %s39_s12 = int_to_ptr.vmem [resolvable:$true] %s38_s12  ;;  %s3154_s14 = int_to_ptr.vmem [resolvable:$true] %s26_s14 }
  0x19   :  { %s3025_s16 = scalar_lea.hbm %s3495_s3, 4096 }
  0x1a   :  { %p3026_p8 = scmp.ne.s32.totalorder %s3495_s3, %s3025_s16  ;;  %p3029_p9 = scmp.lt.u32.totalorder %s3025_s16, %s3495_s3 }
  0x1c   :  { %p3031_p10 = pnand %p3029_p9, %p3026_p8 }
  0x1e   :  { %3034 = shalt.err (!%p3031_p10)
}
  0x1f   :  { %s3035_s21 = scalar_lea.vmem %s39_s12, 4096  ;;  %p3040_p12 = scmp.lt.s32.totalorder %s39_s12, %s39_s12 }
  0x20   :  { %p3036_p11 = scmp.ne.s32.totalorder %s39_s12, %s3035_s21  ;;  %p3041_p13 = scmp.lt.s32.totalorder %s3035_s21, %s3035_s21 }
  0x22   :  { %p3042_p0 = por %p3041_p13, %p3040_p12 }
  0x24   :  { %p3043_p1 = pnand %p3042_p0, %p3036_p11 }
  0x26   :  { %3046 = shalt.err (!%p3043_p1)
}
  0x27   :  { %s3101_s22 = smov 128   ;;  %s3102_s23 = smov 8  }
  0x28   :  { %44 = dma.hbm_to_vmem [thread:$0]  %s3495_s3, 4096, %s39_s12, [#allocation11], %s3101_s22, %s3101_s22, %s3102_s23  }
  0x29   :  { %s3047_s28 = scalar_lea.hbm %s3494_s2, 4096 }
  0x2a   :  { %p3048_p2 = scmp.ne.s32.totalorder %s3494_s2, %s3047_s28  ;;  %p3051_p3 = scmp.lt.u32.totalorder %s3047_s28, %s3494_s2 }
  0x2c   :  { %p3053_p4 = pnand %p3051_p3, %p3048_p2 }
  0x2e   :  { %3056 = shalt.err (!%p3053_p4)
}
  0x2f   :  { %s3057_s9 = scalar_lea.vmem %s3154_s14, 4096  ;;  %p3062_p6 = scmp.lt.s32.totalorder %s3154_s14, %s3154_s14 }
  0x30   :  { %p3058_p5 = scmp.ne.s32.totalorder %s3154_s14, %s3057_s9  ;;  %p3063_p7 = scmp.lt.s32.totalorder %s3057_s9, %s3057_s9 }
  0x32   :  { %p3064_p8 = por %p3063_p7, %p3062_p6 }
  0x34   :  { %p3065_p9 = pnand %p3064_p8, %p3058_p5 }
  0x36   :  { %3068 = shalt.err (!%p3065_p9)
}
  0x37   :  { %32 = dma.hbm_to_vmem [thread:$0]  %s3494_s2, 4096, %s3154_s14, [#allocation9], %s3101_s22, %s3101_s22, %s3102_s23  }
  0x38   :  { %s3103_s11 = smov [#allocation12]   ;;  %s3069_s1 = scalar_lea.hbm %s3496_s4, 6144 }
  0x39   :  { %s50_s0 = sshll.u32 %s3103_s11, 4  ;;  %p3070_p10 = scmp.ne.s32.totalorder %s3496_s4, %s3069_s1  ;;  %s51_s0 = int_to_ptr.vmem [resolvable:$true] %s50_s0 }
  0x3a   :  { %p3073_p11 = scmp.lt.u32.totalorder %s3069_s1, %s3496_s4 }
  0x3c   :  { %p3075_p12 = pnand %p3073_p11, %p3070_p10 }
  0x3e   :  { %3078 = shalt.err (!%p3075_p12)
}
  0x3f   :  { %s3079_s19 = scalar_lea.vmem %s51_s0, 6144  ;;  %p3084_p0 = scmp.lt.s32.totalorder %s51_s0, %s51_s0 }
  0x40   :  { %p3080_p13 = scmp.ne.s32.totalorder %s51_s0, %s3079_s19  ;;  %p3085_p1 = scmp.lt.s32.totalorder %s3079_s19, %s3079_s19 }
  0x42   :  { %p3086_p2 = por %p3085_p1, %p3084_p0 }
  0x44   :  { %p3087_p3 = pnand %p3086_p2, %p3080_p13 }
  0x46   :  { %3090 = shalt.err (!%p3087_p3)
}
  0x47   :  { %56 = dma.hbm_to_vmem [thread:$0]  %s3496_s4, 6144, %s51_s0, [#allocation11], %s3101_s22, %s3101_s22, %s3102_s23  }
  0x48   :  { %3093 = dma.done.wait [#allocation9], 4096  }
  0x49   :  { %3094 = vsyncadd [#allocation9], 4294963200 }
  0x4a   :  { %3095 = dma.done.wait [#allocation11], 10240  }
  0x4b   :  { %3096 = vsyncadd [#allocation11], 4294957056  ;;  %v181_v0 = vld [vmem:[#allocation12] sm:$0xff]  ;;  %v182_v1 = vld [vmem:[#allocation12 + $0x8] sm:$0xff]  ;;  %s3446_s25 = sld [smem:[#allocation7]]  ;;  %s2318_s26 = sld [smem:[#allocation6 + $0x1]] }
  0x4c   :  { %v183_v2 = vld [vmem:[#allocation12 + $0x10] sm:$0xff]  ;;  %v197_v3 = vpack.c.bf16 %v182_v1, %v181_v0  ;;  %v184_v4 = vld [vmem:[#allocation12 + $0x18] sm:$0xff]  ;;  %v185_v6 = vld [vmem:[#allocation12 + $0x20] sm:$0xff]  ;;  %s3448_s27 = sld [smem:[#allocation7 + $0x1]]  ;;  %s3450_s28 = sld [smem:[#allocation6 + $0x2]]  ;;  %vm2193_vm0 = vcmask 7168  }
  0x4d   :  { %v198_v5 = vpack.c.bf16 %v184_v4, %v183_v2  ;;  %v186_v7 = vld [vmem:[#allocation12 + $0x28] sm:$0xff]  ;;  %v69_v9 = vld [vmem:[#allocation10] sm:$0xff]  ;;  %v187_v11 = vld [vmem:[#allocation12 + $0x30] sm:$0xff]  ;;  %s3452_s29 = sld [smem:[#allocation7 + $0x2]]  ;;  %s3454_s30 = sld [smem:[#allocation6 + $0x3]] }
  0x4e   :  { %2740 = vmatprep.subr.bf16.mxu0 %v197_v3  ;;  %v199_v8 = vpack.c.bf16 %v186_v7, %v185_v6  ;;  %v70_v10 = vld [vmem:[#allocation10 + $0x8] sm:$0xff]  ;;  %v188_v12 = vld [vmem:[#allocation12 + $0x38] sm:$0xff]  ;;  %v189_v15 = vld [vmem:[#allocation12 + $0x40] sm:$0xff]  ;;  %s3456_s7 = sld [smem:[#allocation7 + $0x3]]  ;;  %s3458_s8 = sld [smem:[#allocation6 + $0x4]] }
  0x4f   :  { %2741 = vmatpush3.bf16.msra.mxu0 %v197_v3  ;;  %v165_v13 = vpack.c.bf16 %v70_v10, %v69_v9  ;;  %v200_v14 = vpack.c.bf16 %v188_v12, %v187_v11  ;;  %v190_v16 = vld [vmem:[#allocation12 + $0x48] sm:$0xff]  ;;  %v191_v18 = vld [vmem:[#allocation12 + $0x50] sm:$0xff]  ;;  %v192_v19 = vld [vmem:[#allocation12 + $0x58] sm:$0xff]  ;;  %s3460_s9 = sld [smem:[#allocation7 + $0x4]]  ;;  %s3463_s3 = sld [smem:[#allocation6 + $0x5]] }
  0x50   :  { %2742 = vmatprep.subr.bf16.mxu0 %v198_v5  ;;  %v201_v17 = vpack.c.bf16 %v190_v16, %v189_v15  ;;  %v193_v20 = vld [vmem:[#allocation12 + $0x60] sm:$0xff]  ;;  %v194_v21 = vld [vmem:[#allocation12 + $0x68] sm:$0xff]  ;;  %v202_v22 = vpack.c.bf16 %v192_v19, %v191_v18  ;;  %v195_v23 = vld [vmem:[#allocation12 + $0x70] sm:$0xff]  ;;  %s3465_s10 = sld [smem:[#allocation7 + $0x5]]  ;;  %s3467_s11 = sld [smem:[#allocation6 + $0x6]] }
  0x51   :  { %2756 = vmatprep.mubr.bf16.mxu0 %v165_v13  ;;  %v196_v24 = vld [vmem:[#allocation12 + $0x78] sm:$0xff]  ;;  %v203_v25 = vpack.c.bf16 %v194_v21, %v193_v20  ;;  %v71_v27 = vld [vmem:[#allocation10 + $0x10] sm:$0xff]  ;;  %v73_v29 = vld [vmem:[#allocation10 + $0x20] sm:$0xff]  ;;  %s3469_s0 = sld [smem:[#allocation7 + $0x6]]  ;;  %s3472_s12 = sld [smem:[#allocation6 + $0x7]] }
  0x52   :  { %v204_v26 = vpack.c.bf16 %v196_v24, %v195_v23  ;;  %v72_v28 = vld [vmem:[#allocation10 + $0x18] sm:$0xff]  ;;  %v74_v30 = vld [vmem:[#allocation10 + $0x28] sm:$0xff]  ;;  %v75_v33 = vld [vmem:[#allocation10 + $0x30] sm:$0xff]  ;;  %s3474_s13 = sld [smem:[#allocation7 + $0x7]]  ;;  %s2129_s15 = scalar_lea.vmem [#allocation2], %s3446_s25 }
  0x53   :  { %2743 = vmatpush3.bf16.msra.mxu0 %v198_v5  ;;  %v166_v31 = vpack.c.bf16 %v72_v28, %v71_v27  ;;  %v167_v32 = vpack.c.bf16 %v74_v30, %v73_v29  ;;  %v76_v34 = vld [vmem:[#allocation10 + $0x38] sm:$0xff]  ;;  %v77_v35 = vld [vmem:[#allocation10 + $0x40] sm:$0xff]  ;;  %v78_v36 = vld [vmem:[#allocation10 + $0x48] sm:$0xff]  ;;  %s2133_s16 = scalar_lea.vmem [#allocation2], %s2318_s26  ;;  %s2137_s17 = scalar_lea.vmem [#allocation2], %s3448_s27 }
  0x54   :  { %2744 = vmatprep.subr.bf16.mxu0 %v199_v8  ;;  %v168_v37 = vpack.c.bf16 %v76_v34, %v75_v33  ;;  %v169_v38 = vpack.c.bf16 %v78_v36, %v77_v35  ;;  %v79_v39 = vld [vmem:[#allocation10 + $0x50] sm:$0xff]  ;;  %v80_v40 = vld [vmem:[#allocation10 + $0x58] sm:$0xff]  ;;  %v81_v41 = vld [vmem:[#allocation10 + $0x60] sm:$0xff]  ;;  %s2141_s18 = scalar_lea.vmem [#allocation2], %s3450_s28  ;;  %s2145_s19 = scalar_lea.vmem [#allocation2], %s3452_s29 }
  0x55   :  { %v82_v42 = vld [vmem:[#allocation10 + $0x68] sm:$0xff]  ;;  %v170_v43 = vpack.c.bf16 %v80_v40, %v79_v39  ;;  %v83_v45 = vld [vmem:[#allocation10 + $0x70] sm:$0xff]  ;;  %v84_v46 = vld [vmem:[#allocation10 + $0x78] sm:$0xff]  ;;  %s2149_s2 = scalar_lea.vmem [#allocation2], %s3454_s30  ;;  %s2153_s14 = scalar_lea.vmem [#allocation2], %s3456_s7 }
  0x56   :  { %v171_v44 = vpack.c.bf16 %v82_v42, %v81_v41  ;;  %v85_v47 = vld [vmem:[#allocation10 + $0x80] sm:$0xff]  ;;  %v86_v48 = vld [vmem:[#allocation10 + $0x88] sm:$0xff]  ;;  %v172_v49 = vpack.c.bf16 %v84_v46, %v83_v45  ;;  %v87_v51 = vld [vmem:[#allocation10 + $0x90] sm:$0xff]  ;;  %s2157_s4 = scalar_lea.vmem [#allocation2], %s3458_s8  ;;  %s2161_s20 = scalar_lea.vmem [#allocation2], %s3460_s9 }
  0x57   :  { %2745 = vmatpush3.bf16.msra.mxu0 %v199_v8  ;;  %v173_v50 = vpack.c.bf16 %v86_v48, %v85_v47  ;;  %v88_v52 = vld [vmem:[#allocation10 + $0x98] sm:$0xff]  ;;  %v89_v53 = vld [vmem:[#allocation10 + $0xa0] sm:$0xff]  ;;  %v90_v54 = vld [vmem:[#allocation10 + $0xa8] sm:$0xff]  ;;  %s2165_s21 = scalar_lea.vmem [#allocation2], %s3463_s3  ;;  %s2169_s22 = scalar_lea.vmem [#allocation2], %s3465_s10 }
  0x58   :  { %2746 = vmatprep.subr.bf16.mxu0 %v200_v14  ;;  %v174_v55 = vpack.c.bf16 %v88_v52, %v87_v51  ;;  %v175_v56 = vpack.c.bf16 %v90_v54, %v89_v53  ;;  %v91_v57 = vld [vmem:[#allocation10 + $0xb0] sm:$0xff]  ;;  %v92_v58 = vld [vmem:[#allocation10 + $0xb8] sm:$0xff]  ;;  %v93_v59 = vld [vmem:[#allocation10 + $0xc0] sm:$0xff]  ;;  %s2173_s23 = scalar_lea.vmem [#allocation2], %s3467_s11  ;;  %s2177_s24 = scalar_lea.vmem [#allocation2], %s3469_s0 }
  0x59   :  { %v94_v60 = vld [vmem:[#allocation10 + $0xc8] sm:$0xff]  ;;  %v176_v61 = vpack.c.bf16 %v92_v58, %v91_v57  ;;  %v95_v63 = vld [vmem:[#allocation10 + $0xd0] sm:$0xff]  ;;  %v96_v0 = vld [vmem:[#allocation10 + $0xd8] sm:$0xff]  ;;  %s2185_s25 = scalar_lea.vmem [#allocation2], %s3474_s13 }
  0x5a   :  { %v177_v62 = vpack.c.bf16 %v94_v60, %v93_v59  ;;  %v97_v1 = vld [vmem:[#allocation10 + $0xe0] sm:$0xff]  ;;  %v98_v2 = vld [vmem:[#allocation10 + $0xe8] sm:$0xff]  ;;  %v178_v3 = vpack.c.bf16 %v96_v0, %v95_v63  ;;  %v99_v5 = vld [vmem:[#allocation10 + $0xf0] sm:$0xff] }
  0x5b   :  { %2747 = vmatpush3.bf16.msra.mxu0 %v200_v14  ;;  %v179_v4 = vpack.c.bf16 %v98_v2, %v97_v1  ;;  %v100_v6 = vld [vmem:[#allocation10 + $0xf8] sm:$0xff]  ;;  %v3206_v8 = vld [vmem:[#allocation8 + $0x4] ss:$8 sps:$4 sm:$0xff]  }
  0x5c   :  { %2748 = vmatprep.subr.bf16.mxu0 %v201_v17  ;;  %v180_v7 = vpack.c.bf16 %v100_v6, %v99_v5  ;;  %v3208_v9 = vld [vmem:[#allocation8 + $0x44] ss:$8 sps:$4 sm:$0xff]   ;;  %v3216_v63 = vld [vmem:[#allocation8 + $0x14] ss:$8 sps:$4 sm:$0xff]   ;;  %v3224_v1 = vld [vmem:[#allocation8 + $0x10] ss:$8 sps:$4 sm:$0xff]  }
  0x5d   :  { %645 = vmatprep.mubr.bf16.mxu1 %v3208_v9  ;;  %v855_v58 = vld [vmem:[#allocation12 + $0x80] sm:$0xff]  ;;  %v856_v59 = vld [vmem:[#allocation12 + $0x88] sm:$0xff]  ;;  %v3218_v0 = vld [vmem:[#allocation8 + $0x54] ss:$8 sps:$4 sm:$0xff]  }
  0x5e   :  { %v871_v60 = vpack.c.bf16 %v856_v59, %v855_v58  ;;  %v3226_v2 = vld [vmem:[#allocation8 + $0x50] ss:$8 sps:$4 sm:$0xff]   ;;  %v3236_v5 = vld [vmem:[#allocation8 + $0x20] ss:$8 sps:$4 sm:$0xff]  }
  0x5f   :  { %2749 = vmatpush3.bf16.msra.mxu0 %v201_v17  ;;  %v3238_v6 = vld [vmem:[#allocation8 + $0x60] ss:$8 sps:$4 sm:$0xff]  }
  0x60   :  { %2750 = vmatprep.subr.bf16.mxu0 %v202_v22 }
  0x63   :  { %2751 = vmatpush3.bf16.msra.mxu0 %v202_v22 }
  0x64   :  { %2752 = vmatprep.subr.bf16.mxu0 %v203_v25 }
  0x67   :  { %2753 = vmatpush3.bf16.msra.mxu0 %v203_v25 }
  0x68   :  { %2754 = vmatprep.subr.bf16.mxu0 %v204_v26 }
  0x6b   :  { %2755 = vmatpush3.bf16.msra.mxu0 %v204_v26 }
  0x6e   :  { %2757 = vmatmul.mubr.bf16.vlgmr.msra.gmra.mrb[0].mxu0 %v166_v31 }
  0x6f   :  { %2760 = vmatprep.mubr.bf16.mxu0 %v167_v32 }
  0x76   :  { %2761 = vmatmul.mubr.bf16.gmra.mrb[4].mxu0 %v168_v37 }
  0x77   :  { %2764 = vmatprep.mubr.bf16.mxu0 %v169_v38 }
  0x7e   :  { %2765 = vmatmul.mubr.bf16.gmra.mrb[8].mxu0 %v170_v43 }
  0x7f   :  { %2768 = vmatprep.mubr.bf16.mxu0 %v171_v44 }
  0x86   :  { %2769 = vmatmul.mubr.bf16.gmra.mrb[12].mxu0 %v172_v49 }
  0x87   :  { %2772 = vmatprep.mubr.bf16.mxu0 %v173_v50 }
  0x8e   :  { %2773 = vmatmul.mubr.bf16.gmra.mrb[16].mxu0 %v174_v55 }
  0x8f   :  { %2776 = vmatprep.mubr.bf16.mxu0 %v175_v56 }
  0x96   :  { %2777 = vmatmul.mubr.bf16.gmra.mrb[20].mxu0 %v176_v61  ;;  %v3212_v61 = vld [vmem:[#allocation8] ss:$8 sps:$4 sm:$0xff]  }
  0x97   :  { %2780 = vmatprep.mubr.bf16.mxu0 %v177_v62  ;;  %v3214_v62 = vld [vmem:[#allocation8 + $0x40] ss:$8 sps:$4 sm:$0xff]  }
  0x9e   :  { %2781 = vmatmul.mubr.bf16.gmra.mrb[24].mxu0 %v178_v3  ;;  %v3228_v3 = vld [vmem:[#allocation8 + $0x24] ss:$8 sps:$4 sm:$0xff]  }
  0x9f   :  { %2784 = vmatprep.mubr.bf16.mxu0 %v179_v4  ;;  %v3230_v4 = vld [vmem:[#allocation8 + $0x64] ss:$8 sps:$4 sm:$0xff]  }
  0xa6   :  { %2785 = vmatmul.mubr.bf16.gmra.mrb[28].mxu0 %v180_v7  ;;  %v3240_v7 = vld [vmem:[#allocation8 + $0x34] ss:$8 sps:$4 sm:$0xff]  }
  0xa7   :  { %613 = vmatprep.mubr.bf16.mxu0 %v3206_v8 }
 0x141   :  { %v2758_v10 = vpop.f32.mrb[0].mxu0 }
 0x142   :  { %v239_v11 = vpop.f32.mrb[1].mxu0 }
 0x143   :  { %v2759_v12 = vpop.f32.mrb[2].mxu0 }
 0x144   :  { %v399_v13 = vpack.c.bf16 %v2759_v12, %v2758_v10  ;;  %v242_v14 = vpop.f32.mrb[3].mxu0  ;;  %v3242_v10 = vld [vmem:[#allocation8 + $0x74] ss:$8 sps:$4 sm:$0xff]   ;;  %v3250_v12 = vld [vmem:[#allocation8 + $0x70] ss:$8 sps:$4 sm:$0xff]  }
 0x145   :  { %v398_v15 = vpack.c.bf16 %v242_v14, %v239_v11  ;;  %v3248_v11 = vld [vmem:[#allocation8 + $0x30] ss:$8 sps:$4 sm:$0xff]   ;;  %v3257_v14 = vld [vmem:[#allocation8 + $0x80] ss:$8 sps:$4 sm:$0xff]  }
 0x149   :  { %v2762_v16 = vpop.f32.mrb[4].mxu0 }
 0x14a   :  { %v255_v17 = vpop.f32.mrb[5].mxu0 }
 0x14b   :  { %v2763_v18 = vpop.f32.mrb[6].mxu0 }
 0x14c   :  { %v401_v19 = vpack.c.bf16 %v2763_v18, %v2762_v16  ;;  %v258_v20 = vpop.f32.mrb[7].mxu0  ;;  %v3263_v16 = vld [vmem:[#allocation8 + $0x90] ss:$8 sps:$4 sm:$0xff]   ;;  %v3269_v18 = vld [vmem:[#allocation8 + $0xa0] ss:$8 sps:$4 sm:$0xff]  }
 0x14d   :  { %v400_v21 = vpack.c.bf16 %v258_v20, %v255_v17  ;;  %v3265_v17 = vld [vmem:[#allocation8 + $0xa4] ss:$8 sps:$4 sm:$0xff]   ;;  %v3275_v20 = vld [vmem:[#allocation8 + $0xb0] ss:$8 sps:$4 sm:$0xff]  }
 0x151   :  { %v2766_v22 = vpop.f32.mrb[8].mxu0 }
 0x152   :  { %v271_v23 = vpop.f32.mrb[9].mxu0 }
 0x153   :  { %v2767_v24 = vpop.f32.mrb[10].mxu0 }
 0x154   :  { %v403_v25 = vpack.c.bf16 %v2767_v24, %v2766_v22  ;;  %v274_v26 = vpop.f32.mrb[11].mxu0  ;;  %v3281_v22 = vld [vmem:[#allocation8 + $0xc0] ss:$8 sps:$4 sm:$0xff]   ;;  %v3287_v24 = vld [vmem:[#allocation8 + $0xd0] ss:$8 sps:$4 sm:$0xff]  }
 0x155   :  { %v402_v27 = vpack.c.bf16 %v274_v26, %v271_v23  ;;  %v3283_v23 = vld [vmem:[#allocation8 + $0xd4] ss:$8 sps:$4 sm:$0xff]   ;;  %v3293_v26 = vld [vmem:[#allocation8 + $0xe0] ss:$8 sps:$4 sm:$0xff]  }
 0x159   :  { %v2770_v28 = vpop.f32.mrb[12].mxu0 }
 0x15a   :  { %v287_v29 = vpop.f32.mrb[13].mxu0 }
 0x15b   :  { %v2771_v30 = vpop.f32.mrb[14].mxu0 }
 0x15c   :  { %v405_v31 = vpack.c.bf16 %v2771_v30, %v2770_v28  ;;  %v290_v32 = vpop.f32.mrb[15].mxu0  ;;  %v857_v28 = vld [vmem:[#allocation12 + $0x90] sm:$0xff] }
 0x15d   :  { %v404_v33 = vpack.c.bf16 %v290_v32, %v287_v29  ;;  %v858_v29 = vld [vmem:[#allocation12 + $0x98] sm:$0xff]  ;;  %v859_v32 = vld [vmem:[#allocation12 + $0xa0] sm:$0xff] }
 0x15e   :  { %v872_v30 = vpack.c.bf16 %v858_v29, %v857_v28 }
 0x161   :  { %v2774_v34 = vpop.f32.mrb[16].mxu0 }
 0x162   :  { %v303_v35 = vpop.f32.mrb[17].mxu0 }
 0x163   :  { %v2775_v36 = vpop.f32.mrb[18].mxu0 }
 0x164   :  { %v407_v37 = vpack.c.bf16 %v2775_v36, %v2774_v34  ;;  %v306_v38 = vpop.f32.mrb[19].mxu0  ;;  %v862_v36 = vld [vmem:[#allocation12 + $0xb8] sm:$0xff] }
 0x165   :  { %v406_v39 = vpack.c.bf16 %v306_v38, %v303_v35  ;;  %v861_v35 = vld [vmem:[#allocation12 + $0xb0] sm:$0xff]  ;;  %v863_v38 = vld [vmem:[#allocation12 + $0xc0] sm:$0xff] }
 0x167   :  { %2356 = vmatprep.subr.bf16.mxu0 %v406_v39  ;;  %2884 = vmatprep.subr.bf16.mxu1 %v406_v39  ;;  %v864_v39 = vld [vmem:[#allocation12 + $0xc8] sm:$0xff] }
 0x168   :  { %2357 = vmatpush3.bf16.msra.mxu0 %v398_v15  ;;  %2892 = vmatpush3.bf16.msra.mxu1 %v398_v15  ;;  %v3259_v15 = vld [vmem:[#allocation8 + $0x94] ss:$8 sps:$4 sm:$0xff]  }
 0x169   :  { %v2778_v40 = vpop.f32.mrb[20].mxu0  ;;  %2358 = vmatprep.subr.bf16.mxu0 %v407_v37  ;;  %2885 = vmatprep.subr.bf16.mxu1 %v407_v37  ;;  %v874_v37 = vpack.c.bf16 %v862_v36, %v861_v35 }
 0x16a   :  { %v319_v41 = vpop.f32.mrb[21].mxu0 }
 0x16b   :  { %v2779_v42 = vpop.f32.mrb[22].mxu0 }
 0x16c   :  { %v409_v43 = vpack.c.bf16 %v2779_v42, %v2778_v40  ;;  %v322_v44 = vpop.f32.mrb[23].mxu0  ;;  %2359 = vmatpush3.bf16.msra.mxu0 %v399_v13  ;;  %2893 = vmatpush3.bf16.msra.mxu1 %v399_v13  ;;  %v3252_v13 = vld [vmem:[#allocation8 + $0x84] ss:$8 sps:$4 sm:$0xff]   ;;  %v875_v40 = vpack.c.bf16 %v864_v39, %v863_v38  ;;  %v866_v42 = vld [vmem:[#allocation12 + $0xd8] sm:$0xff] }
 0x16d   :  { %v408_v45 = vpack.c.bf16 %v322_v44, %v319_v41  ;;  %v865_v41 = vld [vmem:[#allocation12 + $0xd0] sm:$0xff]  ;;  %v867_v44 = vld [vmem:[#allocation12 + $0xe0] sm:$0xff] }
 0x16f   :  { %2360 = vmatprep.subr.bf16.mxu0 %v408_v45  ;;  %2886 = vmatprep.subr.bf16.mxu1 %v408_v45  ;;  %v868_v45 = vld [vmem:[#allocation12 + $0xe8] sm:$0xff] }
 0x170   :  { %2361 = vmatpush3.bf16.msra.mxu0 %v400_v21  ;;  %2894 = vmatpush3.bf16.msra.mxu1 %v400_v21  ;;  %v3277_v21 = vld [vmem:[#allocation8 + $0xc4] ss:$8 sps:$4 sm:$0xff]  }
 0x171   :  { %v2782_v46 = vpop.f32.mrb[24].mxu0  ;;  %2362 = vmatprep.subr.bf16.mxu0 %v409_v43  ;;  %2887 = vmatprep.subr.bf16.mxu1 %v409_v43  ;;  %v876_v43 = vpack.c.bf16 %v866_v42, %v865_v41 }
 0x172   :  { %v335_v47 = vpop.f32.mrb[25].mxu0 }
 0x173   :  { %v2783_v48 = vpop.f32.mrb[26].mxu0 }
 0x174   :  { %v411_v49 = vpack.c.bf16 %v2783_v48, %v2782_v46  ;;  %v338_v50 = vpop.f32.mrb[27].mxu0  ;;  %2363 = vmatpush3.bf16.msra.mxu0 %v401_v19  ;;  %2895 = vmatpush3.bf16.msra.mxu1 %v401_v19  ;;  %v3271_v19 = vld [vmem:[#allocation8 + $0xb4] ss:$8 sps:$4 sm:$0xff]   ;;  %v877_v46 = vpack.c.bf16 %v868_v45, %v867_v44 }
 0x175   :  { %v410_v51 = vpack.c.bf16 %v338_v50, %v335_v47  ;;  %v869_v47 = vld [vmem:[#allocation12 + $0xf0] sm:$0xff]  ;;  %v870_v48 = vld [vmem:[#allocation12 + $0xf8] sm:$0xff] }
 0x177   :  { %2364 = vmatprep.subr.bf16.mxu0 %v410_v51  ;;  %2888 = vmatprep.subr.bf16.mxu1 %v410_v51 }
 0x178   :  { %2365 = vmatpush3.bf16.msra.mxu0 %v402_v27  ;;  %2896 = vmatpush3.bf16.msra.mxu1 %v402_v27  ;;  %v3295_v27 = vld [vmem:[#allocation8 + $0xf4] ss:$8 sps:$4 sm:$0xff]  }
 0x179   :  { %v2786_v52 = vpop.f32.mrb[28].mxu0  ;;  %2366 = vmatprep.subr.bf16.mxu0 %v411_v49  ;;  %2889 = vmatprep.subr.bf16.mxu1 %v411_v49  ;;  %v878_v49 = vpack.c.bf16 %v870_v48, %v869_v47 }
 0x17a   :  { %v351_v53 = vpop.f32.mrb[29].mxu0 }
 0x17b   :  { %v2787_v54 = vpop.f32.mrb[30].mxu0 }
 0x17c   :  { %v413_v55 = vpack.c.bf16 %v2787_v54, %v2786_v52  ;;  %v354_v56 = vpop.f32.mrb[31].mxu0  ;;  %2367 = vmatpush3.bf16.msra.mxu0 %v403_v25  ;;  %2897 = vmatpush3.bf16.msra.mxu1 %v403_v25  ;;  %v3289_v25 = vld [vmem:[#allocation8 + $0xe4] ss:$8 sps:$4 sm:$0xff]   ;;  %v3305_v52 = vld [vmem:[%s3497_s5] ss:$0 sm:$0xff] }
 0x17d   :  { %v412_v57 = vpack.c.bf16 %v354_v56, %v351_v53 }
 0x17f   :  { %2368 = vmatprep.subr.bf16.mxu0 %v412_v57  ;;  %2890 = vmatprep.subr.bf16.mxu1 %v412_v57 }
 0x180   :  { %2369 = vmatpush3.bf16.msra.mxu0 %v404_v33  ;;  %2898 = vmatpush3.bf16.msra.mxu1 %v404_v33  ;;  %v860_v33 = vld [vmem:[#allocation12 + $0xa8] sm:$0xff] }
 0x181   :  { %2370 = vmatprep.subr.bf16.mxu0 %v413_v55  ;;  %2891 = vmatprep.subr.bf16.mxu1 %v413_v55  ;;  %v873_v34 = vpack.c.bf16 %v860_v33, %v859_v32 }
 0x184   :  { %2371 = vmatpush3.bf16.msra.mxu0 %v405_v31  ;;  %2899 = vmatpush3.bf16.msra.mxu1 %v405_v31  ;;  %v3299_v31 = vld [vmem:[#allocation8 + $0xf0] ss:$8 sps:$4 sm:$0xff]  }
 0x185   :  { %2788 = vmatprep.subr.bf16.mxu0 %v871_v60 }
 0x187   :  { %614 = vmatmul.mubr.bf16.vlgmr.msra.gmra.mrb[32].mxu0 %v3212_v61  ;;  %646 = vmatmul.mubr.bf16.vlgmr.msra.gmra.mrb[0].mxu1 %v3214_v62 }
 0x188   :  { %621 = vmatprep.mubr.bf16.mxu0 %v3216_v63  ;;  %653 = vmatprep.mubr.bf16.mxu1 %v3218_v0 }
 0x189   :  { %2789 = vmatpush3.bf16.msra.mxu0 %v871_v60 }
 0x18a   :  { %2790 = vmatprep.subr.bf16.mxu0 %v872_v30 }
 0x18d   :  { %2791 = vmatpush3.bf16.msra.mxu0 %v872_v30 }
 0x18e   :  { %2792 = vmatprep.subr.bf16.mxu0 %v873_v34 }
 0x18f   :  { %622 = vmatmul.mubr.bf16.gmra.mrb[36].mxu0 %v3224_v1  ;;  %654 = vmatmul.mubr.bf16.gmra.mrb[4].mxu1 %v3226_v2 }
 0x190   :  { %629 = vmatprep.mubr.bf16.mxu0 %v3228_v3  ;;  %661 = vmatprep.mubr.bf16.mxu1 %v3230_v4 }
 0x191   :  { %2793 = vmatpush3.bf16.msra.mxu0 %v873_v34 }
 0x192   :  { %2794 = vmatprep.subr.bf16.mxu0 %v874_v37 }
 0x195   :  { %2795 = vmatpush3.bf16.msra.mxu0 %v874_v37 }
 0x196   :  { %2796 = vmatprep.subr.bf16.mxu0 %v875_v40 }
 0x197   :  { %630 = vmatmul.mubr.bf16.gmra.mrb[40].mxu0 %v3236_v5  ;;  %662 = vmatmul.mubr.bf16.gmra.mrb[8].mxu1 %v3238_v6 }
 0x198   :  { %637 = vmatprep.mubr.bf16.mxu0 %v3240_v7  ;;  %669 = vmatprep.mubr.bf16.mxu1 %v3242_v10 }
 0x199   :  { %2797 = vmatpush3.bf16.msra.mxu0 %v875_v40 }
 0x19a   :  { %2798 = vmatprep.subr.bf16.mxu0 %v876_v43 }
 0x19d   :  { %2799 = vmatpush3.bf16.msra.mxu0 %v876_v43 }
 0x19e   :  { %2800 = vmatprep.subr.bf16.mxu0 %v877_v46 }
 0x19f   :  { %638 = vmatmul.mubr.bf16.gmra.mrb[44].mxu0 %v3248_v11  ;;  %670 = vmatmul.mubr.bf16.gmra.mrb[12].mxu1 %v3250_v12 }
 0x1a0   :  { %677 = vmatprep.mubr.bf16.mxu1 %v3252_v13 }
 0x1a1   :  { %2801 = vmatpush3.bf16.msra.mxu0 %v877_v46 }
 0x1a2   :  { %2802 = vmatprep.subr.bf16.mxu0 %v878_v49 }
 0x1a5   :  { %2803 = vmatpush3.bf16.msra.mxu0 %v878_v49 }
 0x1a7   :  { %678 = vmatmul.mubr.bf16.gmra.mrb[16].mxu1 %v3257_v14 }
 0x1a8   :  { %685 = vmatprep.mubr.bf16.mxu1 %v3259_v15 }
 0x1af   :  { %686 = vmatmul.mubr.bf16.gmra.mrb[20].mxu1 %v3263_v16 }
 0x1b0   :  { %693 = vmatprep.mubr.bf16.mxu1 %v3265_v17 }
 0x1b7   :  { %694 = vmatmul.mubr.bf16.gmra.mrb[24].mxu1 %v3269_v18 }
 0x1b8   :  { %701 = vmatprep.mubr.bf16.mxu1 %v3271_v19 }
 0x1bf   :  { %702 = vmatmul.mubr.bf16.gmra.mrb[28].mxu1 %v3275_v20 }
 0x1c0   :  { %709 = vmatprep.mubr.bf16.mxu1 %v3277_v21 }
 0x1c7   :  { %710 = vmatmul.mubr.bf16.gmra.mrb[32].mxu1 %v3281_v22 }
 0x1c8   :  { %717 = vmatprep.mubr.bf16.mxu1 %v3283_v23 }
 0x1cf   :  { %718 = vmatmul.mubr.bf16.gmra.mrb[36].mxu1 %v3287_v24 }
 0x1d0   :  { %725 = vmatprep.mubr.bf16.mxu1 %v3289_v25 }
 0x1d7   :  { %726 = vmatmul.mubr.bf16.gmra.mrb[40].mxu1 %v3293_v26 }
 0x1d8   :  { %733 = vmatprep.mubr.bf16.mxu1 %v3295_v27 }
 0x1df   :  { %734 = vmatmul.mubr.bf16.gmra.mrb[44].mxu1 %v3299_v31 }
 0x25a   :  { %v2372_v50 = vpop.f32.mrb[32].mxu0  ;;  %v2396_v51 = vpop.f32.mrb[0].mxu1 }
 0x25b   :  { %v2373_v53 = vpop.f32.mrb[33].mxu0  ;;  %v2397_v54 = vpop.f32.mrb[1].mxu1 }
 0x25c   :  { %v2374_v55 = vadd.f32 %v2373_v53, %v2372_v50  ;;  %v2375_v56 = vpop.f32.mrb[34].mxu0  ;;  %v2398_v57 = vadd.f32 %v2397_v54, %v2396_v51  ;;  %v2399_v58 = vpop.f32.mrb[2].mxu1 }
 0x25d   :  { %v2376_v59 = vpop.f32.mrb[35].mxu0  ;;  %v2400_v60 = vpop.f32.mrb[3].mxu1 }
 0x25e   :  { %v616_v28 = vadd.f32 %v2374_v55, %v3305_v52  ;;  %v2377_v29 = vadd.f32 %v2376_v59, %v2375_v56  ;;  %v648_v30 = vadd.f32 %v2398_v57, %v3305_v52  ;;  %v2401_v32 = vadd.f32 %v2400_v60, %v2399_v58 }
 0x260   :  { %v742_v33 = vmax.f32 %v616_v28, 0.0  ;;  %v619_v34 = vadd.f32 %v2377_v29, %v3305_v52  ;;  %v651_v35 = vadd.f32 %v2401_v32, %v3305_v52  ;;  %v750_v37 = vmax.f32 %v648_v30, 0.0 }
 0x262   :  { %v743_v36 = vmax.f32 %v619_v34, 0.0  ;;  %v2378_v38 = vpop.f32.mrb[36].mxu0  ;;  %v751_v39 = vmax.f32 %v651_v35, 0.0  ;;  %v2402_v40 = vpop.f32.mrb[4].mxu1 }
 0x263   :  { %v2379_v41 = vpop.f32.mrb[37].mxu0  ;;  %v2403_v42 = vpop.f32.mrb[5].mxu1 }
 0x264   :  { %v2380_v43 = vadd.f32 %v2379_v41, %v2378_v38  ;;  %v2381_v44 = vpop.f32.mrb[38].mxu0  ;;  %v2404_v45 = vadd.f32 %v2403_v42, %v2402_v40  ;;  %v2405_v46 = vpop.f32.mrb[6].mxu1  ;;  %v838_v47 = vpack.c.bf16 %v743_v36, %v742_v33  ;;  %v3311_v48 = vpack.c.bf16 %v751_v39, %v750_v37 }
 0x265   :  { %v2382_v49 = vpop.f32.mrb[39].mxu0  ;;  %v2406_v50 = vpop.f32.mrb[7].mxu1 }
 0x266   :  { %v624_v51 = vadd.f32 %v2380_v43, %v3305_v52  ;;  %v2383_v53 = vadd.f32 %v2382_v49, %v2381_v44  ;;  %v656_v54 = vadd.f32 %v2404_v45, %v3305_v52  ;;  %v2407_v55 = vadd.f32 %v2406_v50, %v2405_v46  ;;  %2804 = vmatprep.mubr.bf16.mxu0 %v838_v47 }
 0x268   :  { %v744_v56 = vmax.f32 %v624_v51, 0.0  ;;  %v627_v57 = vadd.f32 %v2383_v53, %v3305_v52  ;;  %v659_v58 = vadd.f32 %v2407_v55, %v3305_v52  ;;  %v752_v60 = vmax.f32 %v656_v54, 0.0 }
 0x26a   :  { %v745_v59 = vmax.f32 %v627_v57, 0.0  ;;  %v2384_v28 = vpop.f32.mrb[40].mxu0  ;;  %v753_v29 = vmax.f32 %v659_v58, 0.0  ;;  %v2408_v30 = vpop.f32.mrb[8].mxu1 }
 0x26b   :  { %v2385_v32 = vpop.f32.mrb[41].mxu0  ;;  %v2409_v33 = vpop.f32.mrb[9].mxu1 }
 0x26c   :  { %v2386_v34 = vadd.f32 %v2385_v32, %v2384_v28  ;;  %v2387_v35 = vpop.f32.mrb[42].mxu0  ;;  %v2410_v36 = vadd.f32 %v2409_v33, %v2408_v30  ;;  %v2411_v37 = vpop.f32.mrb[10].mxu1  ;;  %v839_v38 = vpack.c.bf16 %v745_v59, %v744_v56  ;;  %v843_v39 = vpack.c.bf16 %v753_v29, %v752_v60 }
 0x26d   :  { %v2388_v40 = vpop.f32.mrb[43].mxu0  ;;  %v2412_v41 = vpop.f32.mrb[11].mxu1 }
 0x26e   :  { %v632_v42 = vadd.f32 %v2386_v34, %v3305_v52  ;;  %v2389_v43 = vadd.f32 %v2388_v40, %v2387_v35  ;;  %v664_v44 = vadd.f32 %v2410_v36, %v3305_v52  ;;  %v2413_v45 = vadd.f32 %v2412_v41, %v2411_v37  ;;  %2805 = vmatmul.mubr.bf16.vlgmr.msra.gmra.mrb[48].mxu0 %v839_v38 }
 0x270   :  { %v746_v46 = vmax.f32 %v632_v42, 0.0  ;;  %v635_v47 = vadd.f32 %v2389_v43, %v3305_v52  ;;  %v667_v49 = vadd.f32 %v2413_v45, %v3305_v52  ;;  %v754_v51 = vmax.f32 %v664_v44, 0.0 }
 0x272   :  { %v747_v50 = vmax.f32 %v635_v47, 0.0  ;;  %v2390_v53 = vpop.f32.mrb[44].mxu0  ;;  %v755_v54 = vmax.f32 %v667_v49, 0.0  ;;  %v2414_v55 = vpop.f32.mrb[12].mxu1 }
 0x273   :  { %v2391_v56 = vpop.f32.mrb[45].mxu0  ;;  %v2415_v57 = vpop.f32.mrb[13].mxu1 }
 0x274   :  { %v2392_v58 = vadd.f32 %v2391_v56, %v2390_v53  ;;  %v2393_v59 = vpop.f32.mrb[46].mxu0  ;;  %v2416_v60 = vadd.f32 %v2415_v57, %v2414_v55  ;;  %v2417_v28 = vpop.f32.mrb[14].mxu1  ;;  %v840_v29 = vpack.c.bf16 %v747_v50, %v746_v46  ;;  %v844_v30 = vpack.c.bf16 %v755_v54, %v754_v51 }
 0x275   :  { %v2394_v32 = vpop.f32.mrb[47].mxu0  ;;  %v2418_v33 = vpop.f32.mrb[15].mxu1 }
 0x276   :  { %v640_v34 = vadd.f32 %v2392_v58, %v3305_v52  ;;  %v2395_v35 = vadd.f32 %v2394_v32, %v2393_v59  ;;  %v672_v36 = vadd.f32 %v2416_v60, %v3305_v52  ;;  %v2419_v37 = vadd.f32 %v2418_v33, %v2417_v28  ;;  %2808 = vmatprep.mubr.bf16.mxu0 %v840_v29 }
 0x278   :  { %v748_v38 = vmax.f32 %v640_v34, 0.0  ;;  %v643_v40 = vadd.f32 %v2395_v35, %v3305_v52  ;;  %v675_v41 = vadd.f32 %v2419_v37, %v3305_v52  ;;  %v756_v43 = vmax.f32 %v672_v36, 0.0 }
 0x27a   :  { %v749_v42 = vmax.f32 %v643_v40, 0.0  ;;  %v757_v44 = vmax.f32 %v675_v41, 0.0  ;;  %v2420_v45 = vpop.f32.mrb[16].mxu1 }
 0x27b   :  { %v2421_v46 = vpop.f32.mrb[17].mxu1 }
 0x27c   :  { %v2422_v47 = vadd.f32 %v2421_v46, %v2420_v45  ;;  %v2423_v49 = vpop.f32.mrb[18].mxu1  ;;  %v841_v50 = vpack.c.bf16 %v749_v42, %v748_v38  ;;  %v845_v51 = vpack.c.bf16 %v757_v44, %v756_v43 }
 0x27d   :  { %v2424_v53 = vpop.f32.mrb[19].mxu1 }
 0x27e   :  { %v680_v54 = vadd.f32 %v2422_v47, %v3305_v52  ;;  %v2425_v55 = vadd.f32 %v2424_v53, %v2423_v49  ;;  %2809 = vmatmul.mubr.bf16.gmra.mrb[52].mxu0 %v841_v50 }
 0x27f   :  { %2812 = vmatprep.mubr.bf16.mxu0 %v3311_v48 }
 0x280   :  { %v683_v56 = vadd.f32 %v2425_v55, %v3305_v52  ;;  %v758_v57 = vmax.f32 %v680_v54, 0.0 }
 0x282   :  { %v759_v58 = vmax.f32 %v683_v56, 0.0  ;;  %v2426_v59 = vpop.f32.mrb[20].mxu1 }
 0x283   :  { %v2427_v60 = vpop.f32.mrb[21].mxu1 }
 0x284   :  { %v2428_v28 = vadd.f32 %v2427_v60, %v2426_v59  ;;  %v2429_v29 = vpop.f32.mrb[22].mxu1  ;;  %v846_v32 = vpack.c.bf16 %v759_v58, %v758_v57 }
 0x285   :  { %v2430_v33 = vpop.f32.mrb[23].mxu1 }
 0x286   :  { %v688_v34 = vadd.f32 %v2428_v28, %v3305_v52  ;;  %v2431_v35 = vadd.f32 %v2430_v33, %v2429_v29  ;;  %2813 = vmatmul.mubr.bf16.gmra.mrb[56].mxu0 %v843_v39 }
 0x287   :  { %2816 = vmatprep.mubr.bf16.mxu0 %v844_v30 }
 0x288   :  { %v691_v36 = vadd.f32 %v2431_v35, %v3305_v52  ;;  %v760_v37 = vmax.f32 %v688_v34, 0.0 }
 0x28a   :  { %v761_v38 = vmax.f32 %v691_v36, 0.0  ;;  %v2432_v48 = vpop.f32.mrb[24].mxu1 }
 0x28b   :  { %v2433_v40 = vpop.f32.mrb[25].mxu1 }
 0x28c   :  { %v2434_v41 = vadd.f32 %v2433_v40, %v2432_v48  ;;  %v2435_v42 = vpop.f32.mrb[26].mxu1  ;;  %v847_v43 = vpack.c.bf16 %v761_v38, %v760_v37 }
 0x28d   :  { %v2436_v44 = vpop.f32.mrb[27].mxu1 }
 0x28e   :  { %v696_v45 = vadd.f32 %v2434_v41, %v3305_v52  ;;  %v2437_v46 = vadd.f32 %v2436_v44, %v2435_v42  ;;  %2817 = vmatmul.mubr.bf16.gmra.mrb[60].mxu0 %v845_v51 }
 0x28f   :  { %2820 = vmatprep.mubr.bf16.mxu0 %v846_v32 }
 0x290   :  { %v699_v47 = vadd.f32 %v2437_v46, %v3305_v52  ;;  %v762_v49 = vmax.f32 %v696_v45, 0.0 }
 0x292   :  { %v763_v39 = vmax.f32 %v699_v47, 0.0  ;;  %v2438_v30 = vpop.f32.mrb[28].mxu1 }
 0x293   :  { %v2439_v50 = vpop.f32.mrb[29].mxu1 }
 0x294   :  { %v2440_v53 = vadd.f32 %v2439_v50, %v2438_v30  ;;  %v2441_v54 = vpop.f32.mrb[30].mxu1  ;;  %v848_v55 = vpack.c.bf16 %v763_v39, %v762_v49 }
 0x295   :  { %v2442_v56 = vpop.f32.mrb[31].mxu1 }
 0x296   :  { %v704_v57 = vadd.f32 %v2440_v53, %v3305_v52  ;;  %v2443_v58 = vadd.f32 %v2442_v56, %v2441_v54  ;;  %2821 = vmatmul.mubr.bf16.gmra.mrb[64].mxu0 %v847_v43 }
 0x297   :  { %2824 = vmatprep.mubr.bf16.mxu0 %v848_v55 }
 0x298   :  { %v707_v59 = vadd.f32 %v2443_v58, %v3305_v52  ;;  %v764_v60 = vmax.f32 %v704_v57, 0.0 }
 0x29a   :  { %v765_v51 = vmax.f32 %v707_v59, 0.0  ;;  %v2444_v28 = vpop.f32.mrb[32].mxu1 }
 0x29b   :  { %v2445_v29 = vpop.f32.mrb[33].mxu1 }
 0x29c   :  { %v2446_v32 = vadd.f32 %v2445_v29, %v2444_v28  ;;  %v2447_v33 = vpop.f32.mrb[34].mxu1  ;;  %v849_v34 = vpack.c.bf16 %v765_v51, %v764_v60 }
 0x29d   :  { %v2448_v35 = vpop.f32.mrb[35].mxu1 }
 0x29e   :  { %v712_v36 = vadd.f32 %v2446_v32, %v3305_v52  ;;  %v2449_v37 = vadd.f32 %v2448_v35, %v2447_v33  ;;  %2825 = vmatmul.mubr.bf16.gmra.mrb[68].mxu0 %v849_v34 }
 0x2a0   :  { %v715_v38 = vadd.f32 %v2449_v37, %v3305_v52  ;;  %v766_v48 = vmax.f32 %v712_v36, 0.0 }
 0x2a2   :  { %v767_v40 = vmax.f32 %v715_v38, 0.0  ;;  %v2450_v41 = vpop.f32.mrb[36].mxu1 }
 0x2a3   :  { %v2451_v42 = vpop.f32.mrb[37].mxu1 }
 0x2a4   :  { %v2452_v43 = vadd.f32 %v2451_v42, %v2450_v41  ;;  %v2453_v44 = vpop.f32.mrb[38].mxu1  ;;  %v850_v45 = vpack.c.bf16 %v767_v40, %v766_v48 }
 0x2a5   :  { %v2454_v46 = vpop.f32.mrb[39].mxu1 }
 0x2a6   :  { %v720_v47 = vadd.f32 %v2452_v43, %v3305_v52  ;;  %v2455_v49 = vadd.f32 %v2454_v46, %v2453_v44  ;;  %2828 = vmatprep.mubr.bf16.mxu0 %v850_v45 }
 0x2a8   :  { %v723_v39 = vadd.f32 %v2455_v49, %v3305_v52  ;;  %v768_v30 = vmax.f32 %v720_v47, 0.0 }
 0x2aa   :  { %v769_v50 = vmax.f32 %v723_v39, 0.0  ;;  %v2456_v53 = vpop.f32.mrb[40].mxu1 }
 0x2ab   :  { %v2457_v54 = vpop.f32.mrb[41].mxu1 }
 0x2ac   :  { %v2458_v55 = vadd.f32 %v2457_v54, %v2456_v53  ;;  %v2459_v56 = vpop.f32.mrb[42].mxu1  ;;  %v851_v57 = vpack.c.bf16 %v769_v50, %v768_v30 }
 0x2ad   :  { %v2460_v58 = vpop.f32.mrb[43].mxu1 }
 0x2ae   :  { %v728_v59 = vadd.f32 %v2458_v55, %v3305_v52  ;;  %v2461_v60 = vadd.f32 %v2460_v58, %v2459_v56  ;;  %2829 = vmatmul.mubr.bf16.gmra.mrb[72].mxu0 %v851_v57 }
 0x2b0   :  { %v731_v51 = vadd.f32 %v2461_v60, %v3305_v52  ;;  %v770_v28 = vmax.f32 %v728_v59, 0.0 }
 0x2b2   :  { %v771_v29 = vmax.f32 %v731_v51, 0.0  ;;  %v2462_v32 = vpop.f32.mrb[44].mxu1 }
 0x2b3   :  { %v2463_v33 = vpop.f32.mrb[45].mxu1 }
 0x2b4   :  { %v2464_v34 = vadd.f32 %v2463_v33, %v2462_v32  ;;  %v2465_v35 = vpop.f32.mrb[46].mxu1  ;;  %v852_v36 = vpack.c.bf16 %v771_v29, %v770_v28 }
 0x2b5   :  { %v2466_v37 = vpop.f32.mrb[47].mxu1 }
 0x2b6   :  { %v736_v38 = vadd.f32 %v2464_v34, %v3305_v52  ;;  %v2467_v48 = vadd.f32 %v2466_v37, %v2465_v35  ;;  %2832 = vmatprep.mubr.bf16.mxu0 %v852_v36 }
 0x2b8   :  { %v739_v40 = vadd.f32 %v2467_v48, %v3305_v52  ;;  %v772_v41 = vmax.f32 %v736_v38, 0.0 }
 0x2ba   :  { %v773_v42 = vmax.f32 %v739_v40, 0.0 }
 0x2bc   :  { %v853_v43 = vpack.c.bf16 %v773_v42, %v772_v41 }
 0x2be   :  { %2833 = vmatmul.mubr.bf16.gmra.mrb[76].mxu0 %v853_v43 }
 0x2bf   :  { %1288 = vmatprep.mubr.bf16.mxu0 %v3206_v8 }
 0x341   :  { %v2806_v44 = vpop.f32.mrb[48].mxu0 }
 0x342   :  { %v913_v45 = vpop.f32.mrb[49].mxu0 }
 0x343   :  { %v2807_v46 = vpop.f32.mrb[50].mxu0 }
 0x344   :  { %v1073_v47 = vpack.c.bf16 %v2807_v46, %v2806_v44  ;;  %v916_v49 = vpop.f32.mrb[51].mxu0 }
 0x345   :  { %v1072_v39 = vpack.c.bf16 %v916_v49, %v913_v45 }
 0x351   :  { %v2810_v30 = vpop.f32.mrb[52].mxu0 }
 0x352   :  { %v929_v50 = vpop.f32.mrb[53].mxu0 }
 0x353   :  { %v2811_v53 = vpop.f32.mrb[54].mxu0 }
 0x354   :  { %v1075_v54 = vpack.c.bf16 %v2811_v53, %v2810_v30  ;;  %v932_v55 = vpop.f32.mrb[55].mxu0 }
 0x355   :  { %v1074_v56 = vpack.c.bf16 %v932_v55, %v929_v50 }
 0x359   :  { %v2814_v57 = vpop.f32.mrb[56].mxu0 }
 0x35a   :  { %v945_v52 = vpop.f32.mrb[57].mxu0 }
 0x35b   :  { %v2815_v58 = vpop.f32.mrb[58].mxu0 }
 0x35c   :  { %v1077_v59 = vpack.c.bf16 %v2815_v58, %v2814_v57  ;;  %v948_v60 = vpop.f32.mrb[59].mxu0 }
 0x35d   :  { %v1076_v51 = vpack.c.bf16 %v948_v60, %v945_v52 }
 0x361   :  { %v2818_v28 = vpop.f32.mrb[60].mxu0 }
 0x362   :  { %v961_v8 = vpop.f32.mrb[61].mxu0 }
 0x363   :  { %v2819_v29 = vpop.f32.mrb[62].mxu0 }
 0x364   :  { %v1079_v32 = vpack.c.bf16 %v2819_v29, %v2818_v28  ;;  %v964_v33 = vpop.f32.mrb[63].mxu0 }
 0x365   :  { %v1078_v34 = vpack.c.bf16 %v964_v33, %v961_v8  ;;  %v1531_v8 = vld [vmem:[#allocation12 + $0x108] sm:$0xff]  ;;  %v1533_v33 = vld [vmem:[#allocation12 + $0x118] sm:$0xff] }
 0x369   :  { %v2822_v35 = vpop.f32.mrb[64].mxu0 }
 0x36a   :  { %v977_v36 = vpop.f32.mrb[65].mxu0 }
 0x36b   :  { %v2823_v37 = vpop.f32.mrb[66].mxu0 }
 0x36c   :  { %v1081_v38 = vpack.c.bf16 %v2823_v37, %v2822_v35  ;;  %v980_v48 = vpop.f32.mrb[67].mxu0 }
 0x36d   :  { %v1080_v40 = vpack.c.bf16 %v980_v48, %v977_v36 }
 0x36f   :  { %2492 = vmatprep.subr.bf16.mxu0 %v1080_v40 }
 0x370   :  { %2493 = vmatpush3.bf16.msra.mxu0 %v1072_v39 }
 0x371   :  { %v2826_v41 = vpop.f32.mrb[68].mxu0  ;;  %2494 = vmatprep.subr.bf16.mxu0 %v1081_v38 }
 0x372   :  { %v993_v42 = vpop.f32.mrb[69].mxu0 }
 0x373   :  { %v2827_v43 = vpop.f32.mrb[70].mxu0 }
 0x374   :  { %v1083_v44 = vpack.c.bf16 %v2827_v43, %v2826_v41  ;;  %v996_v45 = vpop.f32.mrb[71].mxu0  ;;  %2495 = vmatpush3.bf16.msra.mxu0 %v1073_v47 }
 0x375   :  { %v1082_v46 = vpack.c.bf16 %v996_v45, %v993_v42 }
 0x377   :  { %2496 = vmatprep.subr.bf16.mxu0 %v1082_v46 }
 0x378   :  { %2497 = vmatpush3.bf16.msra.mxu0 %v1074_v56  ;;  %v1530_v56 = vld [vmem:[#allocation12 + $0x100] sm:$0xff] }
 0x379   :  { %2498 = vmatprep.subr.bf16.mxu0 %v1083_v44  ;;  %v1546_v29 = vpack.c.bf16 %v1531_v8, %v1530_v56 }
 0x37b   :  { %2836 = vmatprep.subr.bf16.mxu1 %v1546_v29 }
 0x37c   :  { %2499 = vmatpush3.bf16.msra.mxu0 %v1075_v54  ;;  %v1532_v54 = vld [vmem:[#allocation12 + $0x110] sm:$0xff]  ;;  %2837 = vmatpush3.bf16.msra.mxu1 %v1546_v29 }
 0x37d   :  { %v1547_v35 = vpack.c.bf16 %v1533_v33, %v1532_v54 }
 0x37f   :  { %2838 = vmatprep.subr.bf16.mxu1 %v1547_v35 }
 0x380   :  { %2839 = vmatpush3.bf16.msra.mxu1 %v1547_v35 }
 0x381   :  { %v2830_v49 = vpop.f32.mrb[72].mxu0 }
 0x382   :  { %v1009_v30 = vpop.f32.mrb[73].mxu0 }
 0x383   :  { %v2831_v50 = vpop.f32.mrb[74].mxu0 }
 0x384   :  { %v1085_v53 = vpack.c.bf16 %v2831_v50, %v2830_v49  ;;  %v1012_v55 = vpop.f32.mrb[75].mxu0 }
 0x385   :  { %v1084_v57 = vpack.c.bf16 %v1012_v55, %v1009_v30 }
 0x387   :  { %2500 = vmatprep.subr.bf16.mxu0 %v1084_v57 }
 0x388   :  { %2501 = vmatpush3.bf16.msra.mxu0 %v1076_v51 }
 0x389   :  { %2502 = vmatprep.subr.bf16.mxu0 %v1085_v53 }
 0x38c   :  { %2503 = vmatpush3.bf16.msra.mxu0 %v1077_v59 }
 0x391   :  { %v2834_v39 = vpop.f32.mrb[76].mxu0 }
 0x392   :  { %v1025_v52 = vpop.f32.mrb[77].mxu0 }
 0x393   :  { %v2835_v58 = vpop.f32.mrb[78].mxu0 }
 0x394   :  { %v1087_v60 = vpack.c.bf16 %v2835_v58, %v2834_v39  ;;  %v1028_v47 = vpop.f32.mrb[79].mxu0 }
 0x395   :  { %v1086_v28 = vpack.c.bf16 %v1028_v47, %v1025_v52 }
 0x397   :  { %2504 = vmatprep.subr.bf16.mxu0 %v1086_v28 }
 0x398   :  { %2505 = vmatpush3.bf16.msra.mxu0 %v1078_v34 }
 0x399   :  { %2506 = vmatprep.subr.bf16.mxu0 %v1087_v60 }
 0x39c   :  { %2507 = vmatpush3.bf16.msra.mxu0 %v1079_v32 }
 0x39f   :  { %1289 = vmatmul.mubr.bf16.vlgmr.msra.gmra.mrb[80].mxu0 %v3212_v61  ;;  %v1535_v61 = vld [vmem:[#allocation12 + $0x128] sm:$0xff] }
 0x3a0   :  { %1296 = vmatprep.mubr.bf16.mxu0 %v3216_v63  ;;  %v1536_v63 = vld [vmem:[#allocation12 + $0x130] sm:$0xff] }
 0x3a7   :  { %1297 = vmatmul.mubr.bf16.gmra.mrb[84].mxu0 %v3224_v1 }
 0x3a8   :  { %1304 = vmatprep.mubr.bf16.mxu0 %v3228_v3  ;;  %v1539_v3 = vld [vmem:[#allocation12 + $0x148] sm:$0xff] }
 0x3af   :  { %1305 = vmatmul.mubr.bf16.gmra.mrb[88].mxu0 %v3236_v5  ;;  %v1540_v5 = vld [vmem:[#allocation12 + $0x150] sm:$0xff] }
 0x3b0   :  { %1312 = vmatprep.mubr.bf16.mxu0 %v3240_v7 }
 0x3b7   :  { %1313 = vmatmul.mubr.bf16.gmra.mrb[92].mxu0 %v3248_v11  ;;  %v1543_v11 = vld [vmem:[#allocation12 + $0x168] sm:$0xff] }
 0x3b8   :  { %1320 = vmatprep.mubr.bf16.mxu0 %v3208_v9  ;;  %v1534_v9 = vld [vmem:[#allocation12 + $0x120] sm:$0xff] }
 0x3bf   :  { %1321 = vmatmul.mubr.bf16.gmra.mrb[96].mxu0 %v3214_v62  ;;  %v1548_v62 = vpack.c.bf16 %v1535_v61, %v1534_v9 }
 0x3c0   :  { %1328 = vmatprep.mubr.bf16.mxu0 %v3218_v0  ;;  %v1537_v0 = vld [vmem:[#allocation12 + $0x138] sm:$0xff] }
 0x3c1   :  { %2840 = vmatprep.subr.bf16.mxu1 %v1548_v62  ;;  %v1549_v1 = vpack.c.bf16 %v1537_v0, %v1536_v63 }
 0x3c2   :  { %2841 = vmatpush3.bf16.msra.mxu1 %v1548_v62 }
 0x3c3   :  { %2842 = vmatprep.subr.bf16.mxu1 %v1549_v1 }
 0x3c6   :  { %2843 = vmatpush3.bf16.msra.mxu1 %v1549_v1 }
 0x3c7   :  { %1329 = vmatmul.mubr.bf16.gmra.mrb[100].mxu0 %v3226_v2  ;;  %v1538_v2 = vld [vmem:[#allocation12 + $0x140] sm:$0xff] }
 0x3c8   :  { %1336 = vmatprep.mubr.bf16.mxu0 %v3230_v4  ;;  %v1550_v4 = vpack.c.bf16 %v1539_v3, %v1538_v2 }
 0x3ca   :  { %2844 = vmatprep.subr.bf16.mxu1 %v1550_v4 }
 0x3cb   :  { %2845 = vmatpush3.bf16.msra.mxu1 %v1550_v4 }
 0x3cf   :  { %1337 = vmatmul.mubr.bf16.gmra.mrb[104].mxu0 %v3238_v6  ;;  %v1541_v6 = vld [vmem:[#allocation12 + $0x158] sm:$0xff] }
 0x3d0   :  { %1344 = vmatprep.mubr.bf16.mxu0 %v3242_v10  ;;  %v1551_v7 = vpack.c.bf16 %v1541_v6, %v1540_v5  ;;  %v1542_v10 = vld [vmem:[#allocation12 + $0x160] sm:$0xff] }
 0x3d2   :  { %2846 = vmatprep.subr.bf16.mxu1 %v1551_v7 }
 0x3d3   :  { %2847 = vmatpush3.bf16.msra.mxu1 %v1551_v7 }
 0x3d7   :  { %1345 = vmatmul.mubr.bf16.gmra.mrb[108].mxu0 %v3250_v12  ;;  %v1552_v12 = vpack.c.bf16 %v1543_v11, %v1542_v10 }
 0x3d8   :  { %1352 = vmatprep.mubr.bf16.mxu0 %v3252_v13  ;;  %v1544_v13 = vld [vmem:[#allocation12 + $0x170] sm:$0xff] }
 0x3d9   :  { %2848 = vmatprep.subr.bf16.mxu1 %v1552_v12 }
 0x3da   :  { %2849 = vmatpush3.bf16.msra.mxu1 %v1552_v12 }
 0x3df   :  { %1353 = vmatmul.mubr.bf16.gmra.mrb[112].mxu0 %v3257_v14  ;;  %v1545_v14 = vld [vmem:[#allocation12 + $0x178] sm:$0xff] }
 0x3e0   :  { %1360 = vmatprep.mubr.bf16.mxu0 %v3259_v15  ;;  %v1553_v15 = vpack.c.bf16 %v1545_v14, %v1544_v13 }
 0x3e2   :  { %2850 = vmatprep.subr.bf16.mxu1 %v1553_v15 }
 0x3e3   :  { %2851 = vmatpush3.bf16.msra.mxu1 %v1553_v15 }
 0x3e7   :  { %1361 = vmatmul.mubr.bf16.gmra.mrb[116].mxu0 %v3263_v16 }
 0x3e8   :  { %1368 = vmatprep.mubr.bf16.mxu0 %v3265_v17  ;;  %v3377_v17 = vld [vmem:[%s3497_s5 + $0x1] ss:$0 sm:$0xff] }
 0x3ef   :  { %1369 = vmatmul.mubr.bf16.gmra.mrb[120].mxu0 %v3269_v18 }
 0x3f0   :  { %1376 = vmatprep.mubr.bf16.mxu0 %v3271_v19 }
 0x3f7   :  { %1377 = vmatmul.mubr.bf16.gmra.mrb[124].mxu0 %v3275_v20 }
 0x3f8   :  { %1384 = vmatprep.mubr.bf16.mxu0 %v3277_v21 }
 0x3ff   :  { %1385 = vmatmul.mubr.bf16.gmra.mrb[128].mxu0 %v3281_v22 }
 0x400   :  { %1392 = vmatprep.mubr.bf16.mxu0 %v3283_v23 }
 0x407   :  { %1393 = vmatmul.mubr.bf16.gmra.mrb[132].mxu0 %v3287_v24 }
 0x408   :  { %1400 = vmatprep.mubr.bf16.mxu0 %v3289_v25 }
 0x40f   :  { %1401 = vmatmul.mubr.bf16.gmra.mrb[136].mxu0 %v3293_v26 }
 0x410   :  { %1408 = vmatprep.mubr.bf16.mxu0 %v3295_v27 }
 0x417   :  { %1409 = vmatmul.mubr.bf16.gmra.mrb[140].mxu0 %v3299_v31 }
 0x472   :  { %v2508_v16 = vpop.f32.mrb[80].mxu0 }
 0x473   :  { %v2509_v18 = vpop.f32.mrb[81].mxu0 }
 0x474   :  { %v2510_v19 = vadd.f32 %v2509_v18, %v2508_v16  ;;  %v2511_v20 = vpop.f32.mrb[82].mxu0 }
 0x475   :  { %v2512_v21 = vpop.f32.mrb[83].mxu0 }
 0x476   :  { %v1291_v22 = vadd.f32 %v2510_v19, %v3377_v17  ;;  %v2513_v23 = vadd.f32 %v2512_v21, %v2511_v20 }
 0x478   :  { %v1294_v24 = vadd.f32 %v2513_v23, %v3377_v17  ;;  %v1417_v25 = vmax.f32 %v1291_v22, 0.0 }
 0x47a   :  { %v1418_v26 = vmax.f32 %v1294_v24, 0.0  ;;  %v2514_v27 = vpop.f32.mrb[84].mxu0 }
 0x47b   :  { %v2515_v59 = vpop.f32.mrb[85].mxu0 }
 0x47c   :  { %v2516_v31 = vadd.f32 %v2515_v59, %v2514_v27  ;;  %v2517_v51 = vpop.f32.mrb[86].mxu0  ;;  %v1513_v32 = vpack.c.bf16 %v1418_v26, %v1417_v25 }
 0x47d   :  { %v2518_v34 = vpop.f32.mrb[87].mxu0 }
 0x47e   :  { %v1299_v36 = vadd.f32 %v2516_v31, %v3377_v17  ;;  %v2519_v37 = vadd.f32 %v2518_v34, %v2517_v51  ;;  %2852 = vmatprep.mubr.bf16.mxu1 %v1513_v32 }
 0x480   :  { %v1302_v38 = vadd.f32 %v2519_v37, %v3377_v17  ;;  %v1419_v48 = vmax.f32 %v1299_v36, 0.0 }
 0x482   :  { %v1420_v40 = vmax.f32 %v1302_v38, 0.0  ;;  %v2520_v41 = vpop.f32.mrb[88].mxu0 }
 0x483   :  { %v2521_v42 = vpop.f32.mrb[89].mxu0 }
 0x484   :  { %v2522_v43 = vadd.f32 %v2521_v42, %v2520_v41  ;;  %v2523_v44 = vpop.f32.mrb[90].mxu0  ;;  %v1514_v45 = vpack.c.bf16 %v1420_v40, %v1419_v48 }
 0x485   :  { %v2524_v46 = vpop.f32.mrb[91].mxu0 }
 0x486   :  { %v1307_v49 = vadd.f32 %v2522_v43, %v3377_v17  ;;  %v2525_v30 = vadd.f32 %v2524_v46, %v2523_v44  ;;  %2853 = vmatmul.mubr.bf16.vlgmr.msra.gmra.mrb[48].mxu1 %v1514_v45 }
 0x488   :  { %v1310_v50 = vadd.f32 %v2525_v30, %v3377_v17  ;;  %v1421_v53 = vmax.f32 %v1307_v49, 0.0 }
 0x48a   :  { %v1422_v55 = vmax.f32 %v1310_v50, 0.0  ;;  %v2526_v57 = vpop.f32.mrb[92].mxu0 }
 0x48b   :  { %v2527_v39 = vpop.f32.mrb[93].mxu0 }
 0x48c   :  { %v2528_v52 = vadd.f32 %v2527_v39, %v2526_v57  ;;  %v2529_v58 = vpop.f32.mrb[94].mxu0  ;;  %v1515_v60 = vpack.c.bf16 %v1422_v55, %v1421_v53 }
 0x48d   :  { %v2530_v47 = vpop.f32.mrb[95].mxu0 }
 0x48e   :  { %v1315_v28 = vadd.f32 %v2528_v52, %v3377_v17  ;;  %v2531_v56 = vadd.f32 %v2530_v47, %v2529_v58  ;;  %2856 = vmatprep.mubr.bf16.mxu1 %v1515_v60 }
 0x490   :  { %v1318_v8 = vadd.f32 %v2531_v56, %v3377_v17  ;;  %v1423_v54 = vmax.f32 %v1315_v28, 0.0 }
 0x492   :  { %v1424_v29 = vmax.f32 %v1318_v8, 0.0  ;;  %v2532_v33 = vpop.f32.mrb[96].mxu0 }
 0x493   :  { %v2533_v35 = vpop.f32.mrb[97].mxu0 }
 0x494   :  { %v2534_v9 = vadd.f32 %v2533_v35, %v2532_v33  ;;  %v2535_v61 = vpop.f32.mrb[98].mxu0  ;;  %v1516_v62 = vpack.c.bf16 %v1424_v29, %v1423_v54 }
 0x495   :  { %v2536_v63 = vpop.f32.mrb[99].mxu0 }
 0x496   :  { %v1323_v0 = vadd.f32 %v2534_v9, %v3377_v17  ;;  %v2537_v1 = vadd.f32 %v2536_v63, %v2535_v61  ;;  %2857 = vmatmul.mubr.bf16.gmra.mrb[52].mxu1 %v1516_v62 }
 0x498   :  { %v1326_v2 = vadd.f32 %v2537_v1, %v3377_v17  ;;  %v1425_v3 = vmax.f32 %v1323_v0, 0.0 }
 0x49a   :  { %v1426_v4 = vmax.f32 %v1326_v2, 0.0  ;;  %v2538_v5 = vpop.f32.mrb[100].mxu0 }
 0x49b   :  { %v2539_v6 = vpop.f32.mrb[101].mxu0 }
 0x49c   :  { %v2540_v7 = vadd.f32 %v2539_v6, %v2538_v5  ;;  %v2541_v10 = vpop.f32.mrb[102].mxu0  ;;  %v1517_v11 = vpack.c.bf16 %v1426_v4, %v1425_v3 }
 0x49d   :  { %v2542_v12 = vpop.f32.mrb[103].mxu0 }
 0x49e   :  { %v1331_v13 = vadd.f32 %v2540_v7, %v3377_v17  ;;  %v2543_v14 = vadd.f32 %v2542_v12, %v2541_v10  ;;  %2860 = vmatprep.mubr.bf16.mxu1 %v1517_v11 }
 0x4a0   :  { %v1334_v15 = vadd.f32 %v2543_v14, %v3377_v17  ;;  %v1427_v16 = vmax.f32 %v1331_v13, 0.0 }
 0x4a2   :  { %v1428_v18 = vmax.f32 %v1334_v15, 0.0  ;;  %v2544_v19 = vpop.f32.mrb[104].mxu0 }
 0x4a3   :  { %v2545_v20 = vpop.f32.mrb[105].mxu0 }
 0x4a4   :  { %v2546_v21 = vadd.f32 %v2545_v20, %v2544_v19  ;;  %v2547_v22 = vpop.f32.mrb[106].mxu0  ;;  %v1518_v23 = vpack.c.bf16 %v1428_v18, %v1427_v16 }
 0x4a5   :  { %v2548_v24 = vpop.f32.mrb[107].mxu0 }
 0x4a6   :  { %v1339_v25 = vadd.f32 %v2546_v21, %v3377_v17  ;;  %v2549_v26 = vadd.f32 %v2548_v24, %v2547_v22  ;;  %2861 = vmatmul.mubr.bf16.gmra.mrb[56].mxu1 %v1518_v23 }
 0x4a8   :  { %v1342_v27 = vadd.f32 %v2549_v26, %v3377_v17  ;;  %v1429_v59 = vmax.f32 %v1339_v25, 0.0 }
 0x4aa   :  { %v1430_v31 = vmax.f32 %v1342_v27, 0.0  ;;  %v2550_v51 = vpop.f32.mrb[108].mxu0 }
 0x4ab   :  { %v2551_v32 = vpop.f32.mrb[109].mxu0 }
 0x4ac   :  { %v2552_v34 = vadd.f32 %v2551_v32, %v2550_v51  ;;  %v2553_v36 = vpop.f32.mrb[110].mxu0  ;;  %v1519_v37 = vpack.c.bf16 %v1430_v31, %v1429_v59 }
 0x4ad   :  { %v2554_v38 = vpop.f32.mrb[111].mxu0 }
 0x4ae   :  { %v1347_v48 = vadd.f32 %v2552_v34, %v3377_v17  ;;  %v2555_v40 = vadd.f32 %v2554_v38, %v2553_v36  ;;  %2864 = vmatprep.mubr.bf16.mxu1 %v1519_v37 }
 0x4b0   :  { %v1350_v41 = vadd.f32 %v2555_v40, %v3377_v17  ;;  %v1431_v42 = vmax.f32 %v1347_v48, 0.0 }
 0x4b2   :  { %v1432_v43 = vmax.f32 %v1350_v41, 0.0  ;;  %v2556_v44 = vpop.f32.mrb[112].mxu0 }
 0x4b3   :  { %v2557_v45 = vpop.f32.mrb[113].mxu0 }
 0x4b4   :  { %v2558_v46 = vadd.f32 %v2557_v45, %v2556_v44  ;;  %v2559_v49 = vpop.f32.mrb[114].mxu0  ;;  %v1520_v30 = vpack.c.bf16 %v1432_v43, %v1431_v42 }
 0x4b5   :  { %v2560_v50 = vpop.f32.mrb[115].mxu0 }
 0x4b6   :  { %v1355_v53 = vadd.f32 %v2558_v46, %v3377_v17  ;;  %v2561_v55 = vadd.f32 %v2560_v50, %v2559_v49  ;;  %2865 = vmatmul.mubr.bf16.gmra.mrb[60].mxu1 %v1520_v30 }
 0x4b8   :  { %v1358_v57 = vadd.f32 %v2561_v55, %v3377_v17  ;;  %v1433_v39 = vmax.f32 %v1355_v53, 0.0 }
 0x4ba   :  { %v1434_v52 = vmax.f32 %v1358_v57, 0.0  ;;  %v2562_v58 = vpop.f32.mrb[116].mxu0 }
 0x4bb   :  { %v2563_v60 = vpop.f32.mrb[117].mxu0 }
 0x4bc   :  { %v2564_v47 = vadd.f32 %v2563_v60, %v2562_v58  ;;  %v2565_v28 = vpop.f32.mrb[118].mxu0  ;;  %v1521_v56 = vpack.c.bf16 %v1434_v52, %v1433_v39 }
 0x4bd   :  { %v2566_v8 = vpop.f32.mrb[119].mxu0 }
 0x4be   :  { %v1363_v54 = vadd.f32 %v2564_v47, %v3377_v17  ;;  %v2567_v29 = vadd.f32 %v2566_v8, %v2565_v28  ;;  %2868 = vmatprep.mubr.bf16.mxu1 %v1521_v56 }
 0x4c0   :  { %v1366_v33 = vadd.f32 %v2567_v29, %v3377_v17  ;;  %v1435_v35 = vmax.f32 %v1363_v54, 0.0 }
 0x4c2   :  { %v1436_v9 = vmax.f32 %v1366_v33, 0.0  ;;  %v2568_v61 = vpop.f32.mrb[120].mxu0 }
 0x4c3   :  { %v2569_v62 = vpop.f32.mrb[121].mxu0 }
 0x4c4   :  { %v2570_v63 = vadd.f32 %v2569_v62, %v2568_v61  ;;  %v2571_v0 = vpop.f32.mrb[122].mxu0  ;;  %v1522_v1 = vpack.c.bf16 %v1436_v9, %v1435_v35 }
 0x4c5   :  { %v2572_v2 = vpop.f32.mrb[123].mxu0 }
 0x4c6   :  { %v1371_v3 = vadd.f32 %v2570_v63, %v3377_v17  ;;  %v2573_v4 = vadd.f32 %v2572_v2, %v2571_v0  ;;  %2869 = vmatmul.mubr.bf16.gmra.mrb[64].mxu1 %v1522_v1  ;;  %v2957_v1 = vld [vmem:[#allocation8 + $0x4] ss:$8 sps:$4 sm:$0xff]  }
 0x4c8   :  { %v1374_v5 = vadd.f32 %v2573_v4, %v3377_v17  ;;  %v1437_v6 = vmax.f32 %v1371_v3, 0.0 }
 0x4ca   :  { %v1438_v7 = vmax.f32 %v1374_v5, 0.0  ;;  %v2574_v10 = vpop.f32.mrb[124].mxu0 }
 0x4cb   :  { %v2575_v11 = vpop.f32.mrb[125].mxu0 }
 0x4cc   :  { %v2576_v12 = vadd.f32 %v2575_v11, %v2574_v10  ;;  %v2577_v13 = vpop.f32.mrb[126].mxu0  ;;  %v1523_v14 = vpack.c.bf16 %v1438_v7, %v1437_v6 }
 0x4cd   :  { %v2578_v15 = vpop.f32.mrb[127].mxu0 }
 0x4ce   :  { %v1379_v16 = vadd.f32 %v2576_v12, %v3377_v17  ;;  %v2579_v18 = vadd.f32 %v2578_v15, %v2577_v13  ;;  %2872 = vmatprep.mubr.bf16.mxu1 %v1523_v14 }
 0x4d0   :  { %v1382_v19 = vadd.f32 %v2579_v18, %v3377_v17  ;;  %v1439_v20 = vmax.f32 %v1379_v16, 0.0 }
 0x4d2   :  { %v1440_v21 = vmax.f32 %v1382_v19, 0.0  ;;  %v2580_v22 = vpop.f32.mrb[128].mxu0 }
 0x4d3   :  { %v2581_v23 = vpop.f32.mrb[129].mxu0 }
 0x4d4   :  { %v2582_v24 = vadd.f32 %v2581_v23, %v2580_v22  ;;  %v2583_v25 = vpop.f32.mrb[130].mxu0  ;;  %v1524_v26 = vpack.c.bf16 %v1440_v21, %v1439_v20 }
 0x4d5   :  { %v2584_v27 = vpop.f32.mrb[131].mxu0 }
 0x4d6   :  { %v1387_v59 = vadd.f32 %v2582_v24, %v3377_v17  ;;  %v2585_v31 = vadd.f32 %v2584_v27, %v2583_v25  ;;  %2873 = vmatmul.mubr.bf16.gmra.mrb[68].mxu1 %v1524_v26 }
 0x4d8   :  { %v1390_v51 = vadd.f32 %v2585_v31, %v3377_v17  ;;  %v1441_v32 = vmax.f32 %v1387_v59, 0.0 }
 0x4da   :  { %v1442_v34 = vmax.f32 %v1390_v51, 0.0  ;;  %v2586_v36 = vpop.f32.mrb[132].mxu0 }
 0x4db   :  { %v2587_v37 = vpop.f32.mrb[133].mxu0 }
 0x4dc   :  { %v2588_v38 = vadd.f32 %v2587_v37, %v2586_v36  ;;  %v2589_v48 = vpop.f32.mrb[134].mxu0  ;;  %v1525_v40 = vpack.c.bf16 %v1442_v34, %v1441_v32 }
 0x4dd   :  { %v2590_v41 = vpop.f32.mrb[135].mxu0 }
 0x4de   :  { %v1395_v42 = vadd.f32 %v2588_v38, %v3377_v17  ;;  %v2591_v43 = vadd.f32 %v2590_v41, %v2589_v48  ;;  %2876 = vmatprep.mubr.bf16.mxu1 %v1525_v40 }
 0x4e0   :  { %v1398_v44 = vadd.f32 %v2591_v43, %v3377_v17  ;;  %v1443_v45 = vmax.f32 %v1395_v42, 0.0 }
 0x4e2   :  { %v1444_v46 = vmax.f32 %v1398_v44, 0.0  ;;  %v2592_v49 = vpop.f32.mrb[136].mxu0 }
 0x4e3   :  { %v2593_v30 = vpop.f32.mrb[137].mxu0 }
 0x4e4   :  { %v2594_v50 = vadd.f32 %v2593_v30, %v2592_v49  ;;  %v2595_v53 = vpop.f32.mrb[138].mxu0  ;;  %v1526_v55 = vpack.c.bf16 %v1444_v46, %v1443_v45 }
 0x4e5   :  { %v2596_v57 = vpop.f32.mrb[139].mxu0 }
 0x4e6   :  { %v1403_v39 = vadd.f32 %v2594_v50, %v3377_v17  ;;  %v2597_v52 = vadd.f32 %v2596_v57, %v2595_v53  ;;  %2877 = vmatmul.mubr.bf16.gmra.mrb[72].mxu1 %v1526_v55 }
 0x4e8   :  { %v1406_v58 = vadd.f32 %v2597_v52, %v3377_v17  ;;  %v1445_v60 = vmax.f32 %v1403_v39, 0.0 }
 0x4ea   :  { %v1446_v47 = vmax.f32 %v1406_v58, 0.0  ;;  %v2598_v28 = vpop.f32.mrb[140].mxu0  ;;  %v2955_v58 = vld [vmem:[#allocation8] ss:$8 sps:$4 sm:$0xff]  }
 0x4eb   :  { %v2599_v56 = vpop.f32.mrb[141].mxu0 }
 0x4ec   :  { %v2600_v8 = vadd.f32 %v2599_v56, %v2598_v28  ;;  %v2601_v54 = vpop.f32.mrb[142].mxu0  ;;  %v1527_v29 = vpack.c.bf16 %v1446_v47, %v1445_v60  ;;  %v2958_v60 = vld [vmem:[#allocation8 + $0x14] ss:$8 sps:$4 sm:$0xff]   ;;  %v2960_v47 = vld [vmem:[#allocation8 + $0x10] ss:$8 sps:$4 sm:$0xff]  }
 0x4ed   :  { %v2602_v33 = vpop.f32.mrb[143].mxu0  ;;  %v2961_v28 = vld [vmem:[#allocation8 + $0x24] ss:$8 sps:$4 sm:$0xff]   ;;  %v2963_v56 = vld [vmem:[#allocation8 + $0x20] ss:$8 sps:$4 sm:$0xff]  }
 0x4ee   :  { %v1411_v35 = vadd.f32 %v2600_v8, %v3377_v17  ;;  %v2603_v9 = vadd.f32 %v2602_v33, %v2601_v54  ;;  %2880 = vmatprep.mubr.bf16.mxu1 %v1527_v29  ;;  %v2964_v8 = vld [vmem:[#allocation8 + $0x34] ss:$8 sps:$4 sm:$0xff]   ;;  %v2966_v54 = vld [vmem:[#allocation8 + $0x30] ss:$8 sps:$4 sm:$0xff]   ;;  %v2967_v29 = vld [vmem:[#allocation8 + $0x44] ss:$8 sps:$4 sm:$0xff]  }
 0x4ef   :  { %v2969_v33 = vld [vmem:[#allocation8 + $0x40] ss:$8 sps:$4 sm:$0xff]  }
 0x4f0   :  { %v1414_v61 = vadd.f32 %v2603_v9, %v3377_v17  ;;  %v1447_v62 = vmax.f32 %v1411_v35, 0.0  ;;  %v2970_v35 = vld [vmem:[#allocation8 + $0x54] ss:$8 sps:$4 sm:$0xff]   ;;  %v2972_v9 = vld [vmem:[#allocation8 + $0x50] ss:$8 sps:$4 sm:$0xff]  }
 0x4f2   :  { %v1448_v63 = vmax.f32 %v1414_v61, 0.0  ;;  %v2973_v61 = vld [vmem:[#allocation8 + $0x64] ss:$8 sps:$4 sm:$0xff]  }
 0x4f4   :  { %v1528_v0 = vpack.c.bf16 %v1448_v63, %v1447_v62  ;;  %v2975_v62 = vld [vmem:[#allocation8 + $0x60] ss:$8 sps:$4 sm:$0xff]   ;;  %v2976_v63 = vld [vmem:[#allocation8 + $0x74] ss:$8 sps:$4 sm:$0xff]  }
 0x4f6   :  { %2881 = vmatmul.mubr.bf16.gmra.mrb[76].mxu1 %v1528_v0  ;;  %v2978_v0 = vld [vmem:[#allocation8 + $0x70] ss:$8 sps:$4 sm:$0xff]  }
 0x4f7   :  { %1963 = vmatprep.mubr.bf16.mxu1 %v2957_v1  ;;  %v2979_v1 = vld [vmem:[#allocation8 + $0x84] ss:$8 sps:$4 sm:$0xff]  }
 0x559   :  { %v2854_v2 = vpop.f32.mrb[48].mxu1 }
 0x55a   :  { %v1588_v3 = vpop.f32.mrb[49].mxu1 }
 0x55b   :  { %v2855_v4 = vpop.f32.mrb[50].mxu1 }
 0x55c   :  { %v1748_v5 = vpack.c.bf16 %v2855_v4, %v2854_v2  ;;  %v1591_v6 = vpop.f32.mrb[51].mxu1  ;;  %v2981_v2 = vld [vmem:[#allocation8 + $0x80] ss:$8 sps:$4 sm:$0xff]   ;;  %v2984_v4 = vld [vmem:[#allocation8 + $0x90] ss:$8 sps:$4 sm:$0xff]  }
 0x55d   :  { %v1747_v7 = vpack.c.bf16 %v1591_v6, %v1588_v3  ;;  %v2982_v3 = vld [vmem:[#allocation8 + $0x94] ss:$8 sps:$4 sm:$0xff]   ;;  %v2987_v6 = vld [vmem:[#allocation8 + $0xa0] ss:$8 sps:$4 sm:$0xff]  }
 0x569   :  { %v2858_v10 = vpop.f32.mrb[52].mxu1 }
 0x56a   :  { %v1604_v11 = vpop.f32.mrb[53].mxu1 }
 0x56b   :  { %v2859_v12 = vpop.f32.mrb[54].mxu1 }
 0x56c   :  { %v1750_v13 = vpack.c.bf16 %v2859_v12, %v2858_v10  ;;  %v1607_v14 = vpop.f32.mrb[55].mxu1  ;;  %v2990_v10 = vld [vmem:[#allocation8 + $0xb0] ss:$8 sps:$4 sm:$0xff]   ;;  %v2993_v12 = vld [vmem:[#allocation8 + $0xc0] ss:$8 sps:$4 sm:$0xff]  }
 0x56d   :  { %v1749_v15 = vpack.c.bf16 %v1607_v14, %v1604_v11  ;;  %v2991_v11 = vld [vmem:[#allocation8 + $0xc4] ss:$8 sps:$4 sm:$0xff]   ;;  %v2996_v14 = vld [vmem:[#allocation8 + $0xd0] ss:$8 sps:$4 sm:$0xff]  }
 0x579   :  { %v2862_v16 = vpop.f32.mrb[56].mxu1 }
 0x57a   :  { %v1620_v17 = vpop.f32.mrb[57].mxu1 }
 0x57b   :  { %v2863_v18 = vpop.f32.mrb[58].mxu1 }
 0x57c   :  { %v1752_v19 = vpack.c.bf16 %v2863_v18, %v2862_v16  ;;  %v1623_v20 = vpop.f32.mrb[59].mxu1  ;;  %v2999_v16 = vld [vmem:[#allocation8 + $0xe0] ss:$8 sps:$4 sm:$0xff]   ;;  %v3002_v18 = vld [vmem:[#allocation8 + $0xf0] ss:$8 sps:$4 sm:$0xff]  }
 0x57d   :  { %v1751_v21 = vpack.c.bf16 %v1623_v20, %v1620_v17  ;;  %v3000_v17 = vld [vmem:[#allocation8 + $0xf4] ss:$8 sps:$4 sm:$0xff]   ;;  %v3414_v20 = vld [vmem:[%s3497_s5 + $0x2] ss:$0 sm:$0xff]  ;;  %s2124_s5 = sld [smem:[#allocation6]] }
 0x583   :  { %s2125_s1 = scalar_lea.vmem [#allocation2], %s2124_s5  ;;  %s2181_s5 = scalar_lea.vmem [#allocation2], %s3472_s12 }
 0x589   :  { %v2866_v22 = vpop.f32.mrb[60].mxu1 }
 0x58a   :  { %v1636_v23 = vpop.f32.mrb[61].mxu1 }
 0x58b   :  { %v2867_v24 = vpop.f32.mrb[62].mxu1 }
 0x58c   :  { %v1754_v25 = vpack.c.bf16 %v2867_v24, %v2866_v22  ;;  %v1639_v26 = vpop.f32.mrb[63].mxu1 }
 0x58d   :  { %v1753_v27 = vpack.c.bf16 %v1639_v26, %v1636_v23 }
 0x599   :  { %v2870_v59 = vpop.f32.mrb[64].mxu1 }
 0x59a   :  { %v1652_v31 = vpop.f32.mrb[65].mxu1 }
 0x59b   :  { %v2871_v51 = vpop.f32.mrb[66].mxu1 }
 0x59c   :  { %v1756_v32 = vpack.c.bf16 %v2871_v51, %v2870_v59  ;;  %v1655_v34 = vpop.f32.mrb[67].mxu1 }
 0x59d   :  { %v1755_v36 = vpack.c.bf16 %v1655_v34, %v1652_v31 }
 0x59f   :  { %2628 = vmatprep.subr.bf16.mxu1 %v1755_v36 }
 0x5a0   :  { %2629 = vmatpush3.bf16.msra.mxu1 %v1747_v7  ;;  %v2988_v7 = vld [vmem:[#allocation8 + $0xb4] ss:$8 sps:$4 sm:$0xff]  }
 0x5a1   :  { %2630 = vmatprep.subr.bf16.mxu1 %v1756_v32 }
 0x5a4   :  { %2631 = vmatpush3.bf16.msra.mxu1 %v1748_v5  ;;  %v2985_v5 = vld [vmem:[#allocation8 + $0xa4] ss:$8 sps:$4 sm:$0xff]  }
 0x5a9   :  { %v2874_v37 = vpop.f32.mrb[68].mxu1 }
 0x5aa   :  { %v1668_v38 = vpop.f32.mrb[69].mxu1 }
 0x5ab   :  { %v2875_v48 = vpop.f32.mrb[70].mxu1 }
 0x5ac   :  { %v1758_v40 = vpack.c.bf16 %v2875_v48, %v2874_v37  ;;  %v1671_v41 = vpop.f32.mrb[71].mxu1 }
 0x5ad   :  { %v1757_v42 = vpack.c.bf16 %v1671_v41, %v1668_v38 }
 0x5af   :  { %2632 = vmatprep.subr.bf16.mxu1 %v1757_v42 }
 0x5b0   :  { %2633 = vmatpush3.bf16.msra.mxu1 %v1749_v15  ;;  %v2997_v15 = vld [vmem:[#allocation8 + $0xe4] ss:$8 sps:$4 sm:$0xff]  }
 0x5b1   :  { %2634 = vmatprep.subr.bf16.mxu1 %v1758_v40 }
 0x5b4   :  { %2635 = vmatpush3.bf16.msra.mxu1 %v1750_v13  ;;  %v2994_v13 = vld [vmem:[#allocation8 + $0xd4] ss:$8 sps:$4 sm:$0xff]  }
 0x5b9   :  { %v2878_v43 = vpop.f32.mrb[72].mxu1 }
 0x5ba   :  { %v1684_v44 = vpop.f32.mrb[73].mxu1 }
 0x5bb   :  { %v2879_v45 = vpop.f32.mrb[74].mxu1 }
 0x5bc   :  { %v1760_v46 = vpack.c.bf16 %v2879_v45, %v2878_v43  ;;  %v1687_v49 = vpop.f32.mrb[75].mxu1 }
 0x5bd   :  { %v1759_v30 = vpack.c.bf16 %v1687_v49, %v1684_v44 }
 0x5bf   :  { %2636 = vmatprep.subr.bf16.mxu1 %v1759_v30 }
 0x5c0   :  { %2637 = vmatpush3.bf16.msra.mxu1 %v1751_v21 }
 0x5c1   :  { %2638 = vmatprep.subr.bf16.mxu1 %v1760_v46 }
 0x5c4   :  { %2639 = vmatpush3.bf16.msra.mxu1 %v1752_v19 }
 0x5c9   :  { %v2882_v50 = vpop.f32.mrb[76].mxu1 }
 0x5ca   :  { %v1700_v53 = vpop.f32.mrb[77].mxu1 }
 0x5cb   :  { %v2883_v55 = vpop.f32.mrb[78].mxu1 }
 0x5cc   :  { %v1762_v57 = vpack.c.bf16 %v2883_v55, %v2882_v50  ;;  %v1703_v39 = vpop.f32.mrb[79].mxu1 }
 0x5cd   :  { %v1761_v52 = vpack.c.bf16 %v1703_v39, %v1700_v53 }
 0x5cf   :  { %2640 = vmatprep.subr.bf16.mxu1 %v1761_v52 }
 0x5d0   :  { %2641 = vmatpush3.bf16.msra.mxu1 %v1753_v27 }
 0x5d1   :  { %2642 = vmatprep.subr.bf16.mxu1 %v1762_v57 }
 0x5d4   :  { %2643 = vmatpush3.bf16.msra.mxu1 %v1754_v25 }
 0x5d7   :  { %1964 = vmatmul.mubr.bf16.vlgmr.msra.gmra.mrb[80].mxu1 %v2955_v58 }
 0x5d8   :  { %1971 = vmatprep.mubr.bf16.mxu1 %v2958_v60 }
 0x5df   :  { %1972 = vmatmul.mubr.bf16.gmra.mrb[84].mxu1 %v2960_v47 }
 0x5e0   :  { %1979 = vmatprep.mubr.bf16.mxu1 %v2961_v28 }
 0x5e7   :  { %1980 = vmatmul.mubr.bf16.gmra.mrb[88].mxu1 %v2963_v56 }
 0x5e8   :  { %1987 = vmatprep.mubr.bf16.mxu1 %v2964_v8 }
 0x5ef   :  { %1988 = vmatmul.mubr.bf16.gmra.mrb[92].mxu1 %v2966_v54 }
 0x5f0   :  { %1995 = vmatprep.mubr.bf16.mxu1 %v2967_v29 }
 0x5f7   :  { %1996 = vmatmul.mubr.bf16.gmra.mrb[96].mxu1 %v2969_v33 }
 0x5f8   :  { %2003 = vmatprep.mubr.bf16.mxu1 %v2970_v35 }
 0x5ff   :  { %2004 = vmatmul.mubr.bf16.gmra.mrb[100].mxu1 %v2972_v9 }
 0x600   :  { %2011 = vmatprep.mubr.bf16.mxu1 %v2973_v61 }
 0x607   :  { %2012 = vmatmul.mubr.bf16.gmra.mrb[104].mxu1 %v2975_v62 }
 0x608   :  { %2019 = vmatprep.mubr.bf16.mxu1 %v2976_v63 }
 0x60f   :  { %2020 = vmatmul.mubr.bf16.gmra.mrb[108].mxu1 %v2978_v0 }
 0x610   :  { %2027 = vmatprep.mubr.bf16.mxu1 %v2979_v1 }
 0x617   :  { %2028 = vmatmul.mubr.bf16.gmra.mrb[112].mxu1 %v2981_v2 }
 0x618   :  { %2035 = vmatprep.mubr.bf16.mxu1 %v2982_v3 }
 0x61f   :  { %2036 = vmatmul.mubr.bf16.gmra.mrb[116].mxu1 %v2984_v4 }
 0x620   :  { %2043 = vmatprep.mubr.bf16.mxu1 %v2985_v5 }
 0x627   :  { %2044 = vmatmul.mubr.bf16.gmra.mrb[120].mxu1 %v2987_v6 }
 0x628   :  { %2051 = vmatprep.mubr.bf16.mxu1 %v2988_v7 }
 0x62f   :  { %2052 = vmatmul.mubr.bf16.gmra.mrb[124].mxu1 %v2990_v10 }
 0x630   :  { %2059 = vmatprep.mubr.bf16.mxu1 %v2991_v11 }
 0x637   :  { %2060 = vmatmul.mubr.bf16.gmra.mrb[128].mxu1 %v2993_v12 }
 0x638   :  { %2067 = vmatprep.mubr.bf16.mxu1 %v2994_v13 }
 0x63f   :  { %2068 = vmatmul.mubr.bf16.gmra.mrb[132].mxu1 %v2996_v14 }
 0x640   :  { %2075 = vmatprep.mubr.bf16.mxu1 %v2997_v15 }
 0x647   :  { %2076 = vmatmul.mubr.bf16.gmra.mrb[136].mxu1 %v2999_v16 }
 0x648   :  { %2083 = vmatprep.mubr.bf16.mxu1 %v3000_v17 }
 0x64f   :  { %2084 = vmatmul.mubr.bf16.gmra.mrb[140].mxu1 %v3002_v18 }
 0x6aa   :  { %v2644_v19 = vpop.f32.mrb[80].mxu1 }
 0x6ab   :  { %v2645_v21 = vpop.f32.mrb[81].mxu1 }
 0x6ac   :  { %v2646_v22 = vadd.f32 %v2645_v21, %v2644_v19  ;;  %v2647_v23 = vpop.f32.mrb[82].mxu1 }
 0x6ad   :  { %v2648_v24 = vpop.f32.mrb[83].mxu1 }
 0x6ae   :  { %v1966_v25 = vadd.f32 %v2646_v22, %v3414_v20  ;;  %v2649_v26 = vadd.f32 %v2648_v24, %v2647_v23 }
 0x6b0   :  { %2092 = vst [vmem:[#allocation2] sm:$0xff] %v1966_v25  ;;  %v1969_v27 = vadd.f32 %v2649_v26, %v3414_v20 }
 0x6b2   :  { %2093 = vst [vmem:[#allocation2 + $0x8] sm:$0xff] %v1969_v27  ;;  %v2650_v59 = vpop.f32.mrb[84].mxu1 }
 0x6b3   :  { %v2651_v31 = vpop.f32.mrb[85].mxu1 }
 0x6b4   :  { %v2652_v51 = vadd.f32 %v2651_v31, %v2650_v59  ;;  %v2653_v32 = vpop.f32.mrb[86].mxu1 }
 0x6b5   :  { %v2654_v34 = vpop.f32.mrb[87].mxu1 }
 0x6b6   :  { %v1974_v36 = vadd.f32 %v2652_v51, %v3414_v20  ;;  %v2655_v37 = vadd.f32 %v2654_v34, %v2653_v32 }
 0x6b8   :  { %2094 = vst [vmem:[#allocation2 + $0x10] sm:$0xff] %v1974_v36  ;;  %v1977_v38 = vadd.f32 %v2655_v37, %v3414_v20 }
 0x6ba   :  { %2095 = vst [vmem:[#allocation2 + $0x18] sm:$0xff] %v1977_v38  ;;  %v2656_v48 = vpop.f32.mrb[88].mxu1 }
 0x6bb   :  { %v2657_v40 = vpop.f32.mrb[89].mxu1 }
 0x6bc   :  { %v2658_v41 = vadd.f32 %v2657_v40, %v2656_v48  ;;  %v2659_v42 = vpop.f32.mrb[90].mxu1 }
 0x6bd   :  { %v2660_v43 = vpop.f32.mrb[91].mxu1 }
 0x6be   :  { %v1982_v44 = vadd.f32 %v2658_v41, %v3414_v20  ;;  %v2661_v45 = vadd.f32 %v2660_v43, %v2659_v42 }
 0x6c0   :  { %2096 = vst [vmem:[#allocation2 + $0x20] sm:$0xff] %v1982_v44  ;;  %v1985_v46 = vadd.f32 %v2661_v45, %v3414_v20 }
 0x6c2   :  { %2097 = vst [vmem:[#allocation2 + $0x28] sm:$0xff] %v1985_v46  ;;  %v2662_v49 = vpop.f32.mrb[92].mxu1 }
 0x6c3   :  { %v2663_v30 = vpop.f32.mrb[93].mxu1 }
 0x6c4   :  { %v2664_v50 = vadd.f32 %v2663_v30, %v2662_v49  ;;  %v2665_v53 = vpop.f32.mrb[94].mxu1 }
 0x6c5   :  { %v2666_v55 = vpop.f32.mrb[95].mxu1 }
 0x6c6   :  { %v1990_v57 = vadd.f32 %v2664_v50, %v3414_v20  ;;  %v2667_v39 = vadd.f32 %v2666_v55, %v2665_v53 }
 0x6c8   :  { %2098 = vst [vmem:[#allocation2 + $0x30] sm:$0xff] %v1990_v57  ;;  %v1993_v52 = vadd.f32 %v2667_v39, %v3414_v20 }
 0x6ca   :  { %2099 = vst [vmem:[#allocation2 + $0x38] sm:$0xff] %v1993_v52  ;;  %v2668_v58 = vpop.f32.mrb[96].mxu1 }
 0x6cb   :  { %v2669_v60 = vpop.f32.mrb[97].mxu1 }
 0x6cc   :  { %v2670_v47 = vadd.f32 %v2669_v60, %v2668_v58  ;;  %v2671_v28 = vpop.f32.mrb[98].mxu1 }
 0x6cd   :  { %v2672_v56 = vpop.f32.mrb[99].mxu1 }
 0x6ce   :  { %v1998_v8 = vadd.f32 %v2670_v47, %v3414_v20  ;;  %v2673_v54 = vadd.f32 %v2672_v56, %v2671_v28 }
 0x6d0   :  { %2100 = vst [vmem:[#allocation2 + $0x40] sm:$0xff] %v1998_v8  ;;  %v2001_v29 = vadd.f32 %v2673_v54, %v3414_v20 }
 0x6d2   :  { %2101 = vst [vmem:[#allocation2 + $0x48] sm:$0xff] %v2001_v29  ;;  %v2674_v33 = vpop.f32.mrb[100].mxu1 }
 0x6d3   :  { %v2675_v35 = vpop.f32.mrb[101].mxu1 }
 0x6d4   :  { %v2676_v9 = vadd.f32 %v2675_v35, %v2674_v33  ;;  %v2677_v61 = vpop.f32.mrb[102].mxu1 }
 0x6d5   :  { %v2678_v62 = vpop.f32.mrb[103].mxu1 }
 0x6d6   :  { %v2006_v63 = vadd.f32 %v2676_v9, %v3414_v20  ;;  %v2679_v0 = vadd.f32 %v2678_v62, %v2677_v61 }
 0x6d8   :  { %2102 = vst [vmem:[#allocation2 + $0x50] sm:$0xff] %v2006_v63  ;;  %v2009_v1 = vadd.f32 %v2679_v0, %v3414_v20 }
 0x6da   :  { %2103 = vst [vmem:[#allocation2 + $0x58] sm:$0xff] %v2009_v1  ;;  %v2680_v2 = vpop.f32.mrb[104].mxu1 }
 0x6db   :  { %v2681_v3 = vpop.f32.mrb[105].mxu1 }
 0x6dc   :  { %v2682_v4 = vadd.f32 %v2681_v3, %v2680_v2  ;;  %v2683_v5 = vpop.f32.mrb[106].mxu1 }
 0x6dd   :  { %v2684_v6 = vpop.f32.mrb[107].mxu1 }
 0x6de   :  { %v2014_v7 = vadd.f32 %v2682_v4, %v3414_v20  ;;  %v2685_v10 = vadd.f32 %v2684_v6, %v2683_v5 }
 0x6e0   :  { %2104 = vst [vmem:[#allocation2 + $0x60] sm:$0xff] %v2014_v7  ;;  %v2017_v11 = vadd.f32 %v2685_v10, %v3414_v20 }
 0x6e2   :  { %2105 = vst [vmem:[#allocation2 + $0x68] sm:$0xff] %v2017_v11  ;;  %v2686_v12 = vpop.f32.mrb[108].mxu1 }
 0x6e3   :  { %v2687_v13 = vpop.f32.mrb[109].mxu1 }
 0x6e4   :  { %v2688_v14 = vadd.f32 %v2687_v13, %v2686_v12  ;;  %v2689_v15 = vpop.f32.mrb[110].mxu1 }
 0x6e5   :  { %v2690_v16 = vpop.f32.mrb[111].mxu1 }
 0x6e6   :  { %v2022_v17 = vadd.f32 %v2688_v14, %v3414_v20  ;;  %v2691_v18 = vadd.f32 %v2690_v16, %v2689_v15 }
 0x6e8   :  { %2106 = vst [vmem:[#allocation2 + $0x70] sm:$0xff] %v2022_v17  ;;  %v2025_v19 = vadd.f32 %v2691_v18, %v3414_v20 }
 0x6ea   :  { %2107 = vst [vmem:[#allocation2 + $0x78] sm:$0xff] %v2025_v19  ;;  %v2692_v21 = vpop.f32.mrb[112].mxu1 }
 0x6eb   :  { %v2693_v22 = vpop.f32.mrb[113].mxu1 }
 0x6ec   :  { %v2694_v23 = vadd.f32 %v2693_v22, %v2692_v21  ;;  %v2695_v24 = vpop.f32.mrb[114].mxu1 }
 0x6ed   :  { %v2696_v25 = vpop.f32.mrb[115].mxu1 }
 0x6ee   :  { %v2030_v26 = vadd.f32 %v2694_v23, %v3414_v20  ;;  %v2697_v27 = vadd.f32 %v2696_v25, %v2695_v24 }
 0x6f0   :  { %2108 = vst [vmem:[#allocation2 + $0x80] sm:$0xff] %v2030_v26  ;;  %v2033_v59 = vadd.f32 %v2697_v27, %v3414_v20 }
 0x6f2   :  { %2109 = vst [vmem:[#allocation2 + $0x88] sm:$0xff] %v2033_v59  ;;  %v2698_v31 = vpop.f32.mrb[116].mxu1 }
 0x6f3   :  { %v2699_v51 = vpop.f32.mrb[117].mxu1 }
 0x6f4   :  { %v2700_v32 = vadd.f32 %v2699_v51, %v2698_v31  ;;  %v2701_v34 = vpop.f32.mrb[118].mxu1 }
 0x6f5   :  { %v2702_v36 = vpop.f32.mrb[119].mxu1 }
 0x6f6   :  { %v2038_v37 = vadd.f32 %v2700_v32, %v3414_v20  ;;  %v2703_v38 = vadd.f32 %v2702_v36, %v2701_v34 }
 0x6f8   :  { %2110 = vst [vmem:[#allocation2 + $0x90] sm:$0xff] %v2038_v37  ;;  %v2041_v48 = vadd.f32 %v2703_v38, %v3414_v20 }
 0x6fa   :  { %2111 = vst [vmem:[#allocation2 + $0x98] sm:$0xff] %v2041_v48  ;;  %v2704_v40 = vpop.f32.mrb[120].mxu1 }
 0x6fb   :  { %v2705_v41 = vpop.f32.mrb[121].mxu1 }
 0x6fc   :  { %v2706_v42 = vadd.f32 %v2705_v41, %v2704_v40  ;;  %v2707_v43 = vpop.f32.mrb[122].mxu1 }
 0x6fd   :  { %v2708_v44 = vpop.f32.mrb[123].mxu1 }
 0x6fe   :  { %v2046_v45 = vadd.f32 %v2706_v42, %v3414_v20  ;;  %v2709_v46 = vadd.f32 %v2708_v44, %v2707_v43 }
 0x700   :  { %2112 = vst [vmem:[#allocation2 + $0xa0] sm:$0xff] %v2046_v45  ;;  %v2049_v49 = vadd.f32 %v2709_v46, %v3414_v20 }
 0x702   :  { %2113 = vst [vmem:[#allocation2 + $0xa8] sm:$0xff] %v2049_v49  ;;  %v2710_v30 = vpop.f32.mrb[124].mxu1 }
 0x703   :  { %v2711_v50 = vpop.f32.mrb[125].mxu1 }
 0x704   :  { %v2712_v53 = vadd.f32 %v2711_v50, %v2710_v30  ;;  %v2713_v55 = vpop.f32.mrb[126].mxu1 }
 0x705   :  { %v2714_v57 = vpop.f32.mrb[127].mxu1 }
 0x706   :  { %v2054_v39 = vadd.f32 %v2712_v53, %v3414_v20  ;;  %v2715_v52 = vadd.f32 %v2714_v57, %v2713_v55 }
 0x708   :  { %2114 = vst [vmem:[#allocation2 + $0xb0] sm:$0xff] %v2054_v39  ;;  %v2057_v58 = vadd.f32 %v2715_v52, %v3414_v20 }
 0x70a   :  { %2115 = vst [vmem:[#allocation2 + $0xb8] sm:$0xff] %v2057_v58  ;;  %v2716_v60 = vpop.f32.mrb[128].mxu1 }
 0x70b   :  { %v2717_v47 = vpop.f32.mrb[129].mxu1 }
 0x70c   :  { %v2718_v28 = vadd.f32 %v2717_v47, %v2716_v60  ;;  %v2719_v56 = vpop.f32.mrb[130].mxu1 }
 0x70d   :  { %v2720_v8 = vpop.f32.mrb[131].mxu1 }
 0x70e   :  { %v2062_v54 = vadd.f32 %v2718_v28, %v3414_v20  ;;  %v2721_v29 = vadd.f32 %v2720_v8, %v2719_v56 }
 0x710   :  { %2116 = vst [vmem:[#allocation2 + $0xc0] sm:$0xff] %v2062_v54  ;;  %v2065_v33 = vadd.f32 %v2721_v29, %v3414_v20 }
 0x712   :  { %2117 = vst [vmem:[#allocation2 + $0xc8] sm:$0xff] %v2065_v33  ;;  %v2722_v35 = vpop.f32.mrb[132].mxu1 }
 0x713   :  { %v2723_v9 = vpop.f32.mrb[133].mxu1 }
 0x714   :  { %v2724_v61 = vadd.f32 %v2723_v9, %v2722_v35  ;;  %v2725_v62 = vpop.f32.mrb[134].mxu1 }
 0x715   :  { %v2726_v63 = vpop.f32.mrb[135].mxu1 }
 0x716   :  { %v2070_v0 = vadd.f32 %v2724_v61, %v3414_v20  ;;  %v2727_v1 = vadd.f32 %v2726_v63, %v2725_v62 }
 0x718   :  { %2118 = vst [vmem:[#allocation2 + $0xd0] sm:$0xff] %v2070_v0  ;;  %v2073_v2 = vadd.f32 %v2727_v1, %v3414_v20 }
 0x71a   :  { %2119 = vst [vmem:[#allocation2 + $0xd8] sm:$0xff] %v2073_v2  ;;  %v2728_v3 = vpop.f32.mrb[136].mxu1 }
 0x71b   :  { %v2729_v4 = vpop.f32.mrb[137].mxu1 }
 0x71c   :  { %v2730_v5 = vadd.f32 %v2729_v4, %v2728_v3  ;;  %v2731_v6 = vpop.f32.mrb[138].mxu1 }
 0x71d   :  { %v2732_v7 = vpop.f32.mrb[139].mxu1 }
 0x71e   :  { %v2078_v10 = vadd.f32 %v2730_v5, %v3414_v20  ;;  %v2733_v11 = vadd.f32 %v2732_v7, %v2731_v6 }
 0x720   :  { %2120 = vst [vmem:[#allocation2 + $0xe0] sm:$0xff] %v2078_v10  ;;  %v2081_v12 = vadd.f32 %v2733_v11, %v3414_v20 }
 0x722   :  { %2121 = vst [vmem:[#allocation2 + $0xe8] sm:$0xff] %v2081_v12  ;;  %v2734_v13 = vpop.f32.mrb[140].mxu1 }
 0x723   :  { %v2735_v14 = vpop.f32.mrb[141].mxu1 }
 0x724   :  { %v2736_v15 = vadd.f32 %v2735_v14, %v2734_v13  ;;  %v2737_v16 = vpop.f32.mrb[142].mxu1 }
 0x725   :  { %v2738_v17 = vpop.f32.mrb[143].mxu1 }
 0x726   :  { %v2086_v18 = vadd.f32 %v2736_v15, %v3414_v20  ;;  %v2739_v19 = vadd.f32 %v2738_v17, %v2737_v16 }
 0x728   :  { %2122 = vst [vmem:[#allocation2 + $0xf0] sm:$0xff] %v2086_v18  ;;  %v2089_v21 = vadd.f32 %v2739_v19, %v3414_v20 }
 0x72a   :  { %2123 = vst [vmem:[#allocation2 + $0xf8] sm:$0xff] %v2089_v21 }
 0x731   :  { %v2126_v22 = vld [vmem:[%s2125_s1] sm:$0x1] }
 0x732   :  { %v2130_v23 = vld [vmem:[%s2129_s15] sm:$0x1]  ;;  %2127 = vst [vmem:[#allocation3] sm:$0x1] %v2126_v22 }
 0x733   :  { %v2134_v24 = vld [vmem:[%s2133_s16] sm:$0x1]  ;;  %2131 = vst [vmem:[#allocation4] sm:$0x1] %v2130_v23 }
 0x734   :  { %2135 = vst [vmem:[#allocation3 + $0x1] sm:$0x1] %v2134_v24  ;;  %v2138_v20 = vld [vmem:[%s2137_s17] sm:$0x1] }
 0x735   :  { %v2142_v25 = vld [vmem:[%s2141_s18] sm:$0x1]  ;;  %2139 = vst [vmem:[#allocation4 + $0x1] sm:$0x1] %v2138_v20 }
 0x736   :  { %v2146_v26 = vld [vmem:[%s2145_s19] sm:$0x1]  ;;  %2143 = vst [vmem:[#allocation3 + $0x2] sm:$0x1] %v2142_v25 }
 0x737   :  { %2147 = vst [vmem:[#allocation4 + $0x2] sm:$0x1] %v2146_v26  ;;  %v2150_v27 = vld [vmem:[%s2149_s2] sm:$0x1] }
 0x738   :  { %v2154_v59 = vld [vmem:[%s2153_s14] sm:$0x1]  ;;  %2151 = vst [vmem:[#allocation3 + $0x3] sm:$0x1] %v2150_v27 }
 0x739   :  { %v2158_v31 = vld [vmem:[%s2157_s4] sm:$0x1]  ;;  %2155 = vst [vmem:[#allocation4 + $0x3] sm:$0x1] %v2154_v59 }
 0x73a   :  { %2159 = vst [vmem:[#allocation3 + $0x4] sm:$0x1] %v2158_v31  ;;  %v2162_v51 = vld [vmem:[%s2161_s20] sm:$0x1] }
 0x73b   :  { %v2166_v32 = vld [vmem:[%s2165_s21] sm:$0x1]  ;;  %2163 = vst [vmem:[#allocation4 + $0x4] sm:$0x1] %v2162_v51 }
 0x73c   :  { %v2170_v34 = vld [vmem:[%s2169_s22] sm:$0x1]  ;;  %2167 = vst [vmem:[#allocation3 + $0x5] sm:$0x1] %v2166_v32 }
 0x73d   :  { %2171 = vst [vmem:[#allocation4 + $0x5] sm:$0x1] %v2170_v34  ;;  %v2174_v36 = vld [vmem:[%s2173_s23] sm:$0x1] }
 0x73e   :  { %v2178_v37 = vld [vmem:[%s2177_s24] sm:$0x1]  ;;  %2175 = vst [vmem:[#allocation3 + $0x6] sm:$0x1] %v2174_v36 }
 0x73f   :  { %v2182_v38 = vld [vmem:[%s2181_s5] sm:$0x1]  ;;  %2179 = vst [vmem:[#allocation4 + $0x6] sm:$0x1] %v2178_v37 }
 0x740   :  { %2183 = vst [vmem:[#allocation3 + $0x7] sm:$0x1] %v2182_v38  ;;  %v2186_v48 = vld [vmem:[%s2185_s25] sm:$0x1] }
 0x741   :  { %2187 = vst [vmem:[#allocation4 + $0x7] sm:$0x1] %v2186_v48 }
 0x747   :  { %v2188_v40 = vld [vmem:[#allocation3] sm:$0xff] }
 0x748   :  { %v2189_v41 = vld [vmem:[#allocation4] sm:$0xff] }
 0x749   :  { %v2190_v42 = vmul.f32 %v2189_v41, %v2188_v40 }
 0x74b   :  { %2191 = vadd.xlane.f32.xlu0 %v2190_v42 }
 0x7d8   :  { %v2192_v43 = vpop.xlane.xlu0 %2191 }
 0x7d9   :  { %2194 = vst.msk [vmem:[%s3498_s6] sm:$0xff] %vm2193_vm0, %v2192_v43 }
 0x7da   :  { %2199 = vsyncpa [#allocation9], 1 }
 0x7db   :  { %2200 = vsyncpa [#allocation11], 1 }

</bundles_post_ra>
